<compile_context>
chip_gen: v5e
topology: v5e:2x2
jax: 0.10.0
libtpu: 0.0.40
codegen_flags: <defaults>
</compile_context>

<pallas_src>
import math
import numpy as np
import jax
import jax.numpy as jnp
from jax.experimental import pallas as pl
from jax.experimental.pallas import tpu as pltpu

# ------------------------- static config (mirrors __init__) -------------------
RHO = 100.0
DATA_WEIGHT = 1.0
BODY_POSE_WEIGHT = 2.0
BENDING_PRIOR_WEIGHT = 3.17
STANDING_WEIGHT = 500.0          # loss_type == 'sgnify', prev_res_path is None
BONEORIENTATION_LOSS = True
LEFT_HANDPOSE_PATH = 'None'      # -> left-hand bone-orientation branch statically off
USE_JOINTS_CONF = True
USE_VPOSER = True

# deterministic synthetic camera (perspective, translation along z only)
FOCAL = 500.0
CENTER = 112.0
CAM_TZ = 2.5

NUM_JOINTS = 118                 # 25 body + 21 lhand + 21 rhand + 51 face
LANES = 128
LOWER_BODY_JOINTS = (11, 22, 23, 24, 14, 19, 20, 21)

BODY_PAIRS = [(0, 1), (1, 8), (2, 3), (3, 4), (5, 6), (6, 7), (9, 10), (12, 13)]
HAND_PAIRS_BASE = [(0, 1), (1, 2), (2, 3), (3, 4), (0, 5)]
RHAND_START = 46
RHAND_PAIRS = [(a + RHAND_START, b + RHAND_START) for a, b in HAND_PAIRS_BASE]
NUM_BODY_PAIRS = len(BODY_PAIRS)       # 8
NUM_RHAND_PAIRS = len(RHAND_PAIRS)     # 5
SEL_ROWS = 16                          # padded to a sublane multiple

# SMPLify bending (angle) prior: flat body-pose indices [52,55,9,12] -> (joint, coord)
ANGLE_POS = [(17, 1)]                               # sign +1
ANGLE_NEG = [(18, 1), (3, 0), (4, 0)]               # sign -1

# combined +/-1 selection slab for pair differences (rows 0..7 body, 8..12 rhand)
S_COMBINED = np.zeros((SEL_ROWS, LANES), np.float32)
for _r, (_a, _b) in enumerate(BODY_PAIRS + RHAND_PAIRS):
    S_COMBINED[_r, _a] = 1.0
    S_COMBINED[_r, _b] = -1.0


# ---------------------------- shared math helpers -----------------------------
def _gmof(x):
    sq = x * x
    return (RHO * RHO) * sq / (sq + RHO * RHO)


def _rot6d(aa):
    """axis-angle (N,3) -> 6D rotation rep (N,6). Row-major (reference only)."""
    angles = jnp.sqrt(jnp.sum(aa * aa, axis=-1, keepdims=True))
    half = 0.5 * angles
    small = jnp.abs(angles) < 1e-6
    safe = jnp.where(small, 1.0, angles)
    s = jnp.where(small, 0.5 - angles * angles / 48.0, jnp.sin(half) / safe)
    qr = jnp.cos(half)
    qv = aa * s
    quat = jnp.concatenate([qr, qv], axis=-1)
    r = quat[:, 0:1]
    i = quat[:, 1:2]
    j = quat[:, 2:3]
    k = quat[:, 3:4]
    two_s = 2.0 / jnp.sum(quat * quat, axis=-1, keepdims=True)
    return jnp.concatenate(
        [
            1.0 - two_s * (j * j + k * k),
            two_s * (i * j - k * r),
            two_s * (i * k + j * r),
            two_s * (i * j + k * r),
            1.0 - two_s * (i * i + k * k),
            two_s * (j * k - i * r),
        ],
        axis=-1,
    )


def _l2loss_6d(a, b, w):
    d = _rot6d(a) - _rot6d(b)
    return jnp.sum(d * d) * (w * w)


def _rot6d_lanes(aa):
    """Lane-major rot6d: aa is (3, L) [x;y;z rows]; returns six (1, L) rows."""
    ax = aa[0:1, :]
    ay = aa[1:2, :]
    az = aa[2:3, :]
    sq = ax * ax + ay * ay + az * az
    ang = jnp.sqrt(sq)
    half = 0.5 * ang
    small = ang < 1e-6
    safe = jnp.where(small, 1.0, ang)
    s = jnp.where(small, 0.5 - sq / 48.0, jnp.sin(half) / safe)
    r = jnp.cos(half)
    i = ax * s
    j = ay * s
    k = az * s
    two_s = 2.0 / (r * r + i * i + j * j + k * k)
    return (1.0 - two_s * (j * j + k * k),
            two_s * (i * j - k * r),
            two_s * (i * k + j * r),
            two_s * (i * j + k * r),
            1.0 - two_s * (i * i + k * k),
            two_s * (j * k - i * r))


# --------------------------------- kernel -------------------------------------
def smplify_loss_kernel(flags_ref, data_ref, sel_ref, loss_ref):
    # ---- lane-major loads (each a (1,128) / (3,128) vreg row) ----
    j3x = data_ref[0:1, :]
    j3y = data_ref[1:2, :]
    j3z = data_ref[2:3, :]
    gtx = data_ref[3:4, :]
    gty = data_ref[4:5, :]
    conf = data_ref[5:6, :]
    jw = data_ref[6:7, :]
    pose = data_ref[8:11, :]            # (3,128) axis-angle, glob in lane 21
    pe = data_ref[11:12, :]             # (1,128) VPoser embedding (lanes 0..31)

    # --- camera: perspective projection (lane-parallel)
    z = j3z + CAM_TZ
    px = FOCAL * j3x / z + CENTER
    py = FOCAL * j3y / z + CENTER
    dx = gtx - px
    dy = gty - py

    # --- joint (data) term, per-lane partial
    w = conf * jw if USE_JOINTS_CONF else jw
    joint_p = (w * w) * (_gmof(dx) + _gmof(dy)) * (DATA_WEIGHT ** 2)   # (1,128)

    # --- pose prior (use_vposer=True path), per-lane partial
    pprior_p = pe * pe * (BODY_POSE_WEIGHT ** 2)                        # (1,128)

    # --- bending (angle) prior on knees / elbows (4 selected pose entries)
    ri = jax.lax.broadcasted_iota(jnp.int32, (3, LANES), 0)
    ci = jax.lax.broadcasted_iota(jnp.int32, (3, LANES), 1)
    is_pos = jnp.zeros((3, LANES), jnp.bool_)
    for (jt, cc) in ANGLE_POS:
        is_pos = is_pos | ((ri == cc) & (ci == jt))
    is_neg = jnp.zeros((3, LANES), jnp.bool_)
    for (jt, cc) in ANGLE_NEG:
        is_neg = is_neg | ((ri == cc) & (ci == jt))
    sgn = jnp.where(is_pos, 1.0, 0.0) - jnp.where(is_neg, 1.0, 0.0)
    sel = jnp.where(is_pos | is_neg, 1.0, 0.0)
    e = jnp.exp(pose * sgn)
    ang = e * e * sel * BENDING_PRIOR_WEIGHT                            # (3,128)
    ang_p = jnp.sum(ang, axis=0, keepdims=True)                         # (1,128)

    # --- bone-orientation term: +/-1 selection slab, VPU mul + one lane reduce
    bone_loss = jnp.float32(0.0)
    if BONEORIENTATION_LOSS:
        S = sel_ref[...]                                                # (16,128)
        pdx = jnp.sum(S * dx, axis=1, keepdims=True)                    # (16,1)
        pdy = jnp.sum(S * dy, axis=1, keepdims=True)
        gm = _gmof(pdx) + _gmof(pdy)                                    # (16,1)
        rowi = jax.lax.broadcasted_iota(jnp.int32, (SEL_ROWS, 1), 0)
        body_m = (rowi < NUM_BODY_PAIRS).astype(jnp.float32)
        rh_m = ((rowi >= NUM_BODY_PAIRS)
                & (rowi < NUM_BODY_PAIRS + NUM_RHAND_PAIRS)).astype(jnp.float32)
        rh_flag = (flags_ref[0] > 0).astype(jnp.float32)
        bone_loss = jnp.sum(gm * (body_m + rh_flag * rh_m)) * (DATA_WEIGHT ** 2)
        # left-hand branch statically disabled (left_handpose_path == 'None')

    # --- base total: one fused cross-lane reduce + the tiny bone scalar
    loss_ref[0, 0] = jnp.sum(joint_p + pprior_p + ang_p) + bone_loss

    # --- standing prior: only when NO lower-body joint has confidence
    #     (gated so the rot6d transcendental chain is skipped otherwise)
    @pl.when(flags_ref[1] != 0)
    def _():
        li = jax.lax.broadcasted_iota(jnp.int32, (1, LANES), 1)
        # standing_weight > 50 -> zero body-pose joints 0..14, keep 15..20
        keep = ((li >= 15) & (li <= 20)).astype(jnp.float32)            # (1,128)
        ri3 = jax.lax.broadcasted_iota(jnp.int32, (3, LANES), 0)
        ci3 = jax.lax.broadcasted_iota(jnp.int32, (3, LANES), 1)
        glob_ref_c = jnp.where((ri3 == 0) & (ci3 == 21),
                               jnp.float32(math.pi), 0.0)
        ref_aa = pose * keep + glob_ref_c
        c6 = _rot6d_lanes(pose)
        r6 = _rot6d_lanes(ref_aa)
        ssq = jnp.zeros((1, LANES), jnp.float32)
        for a, b in zip(c6, r6):
            d6 = a - b
            ssq = ssq + d6 * d6
        w2 = jnp.float32(STANDING_WEIGHT ** 2)           # body rows weight
        w4 = jnp.float32(STANDING_WEIGHT ** 4)           # global-orient row weight
        wt = jnp.where(li < 21, w2, jnp.where(li == 21, w4, 0.0))
        loss_ref[0, 0] = loss_ref[0, 0] + jnp.sum(ssq * wt)


# --------------------------------- wrapper ------------------------------------
def smplify_loss_pallas(joints3d, gt_joints, joints_conf, joint_weights,
                        full_pose, pose_embedding):
    J = NUM_JOINTS
    j3 = joints3d[0].astype(jnp.float32)            # (J,3)
    gt = gt_joints[0].astype(jnp.float32)           # (J,2)
    conf = joints_conf[0].astype(jnp.float32)       # (J,)
    jw = joint_weights[0].astype(jnp.float32)       # (J,)

    # lane-major joint slab (rows: j3x j3y j3z gtx gty conf jw 0), zero-padded lanes
    joint_rows = jnp.concatenate(
        [j3.T, gt.T, conf[None, :], jw[None, :], jnp.zeros((1, J), jnp.float32)],
        axis=0)                                                     # (8, J)
    joint_rows = jnp.pad(joint_rows, ((0, 0), (0, LANES - J)))

    # lane-major pose slab: body joints 0..20 in lanes 0..20, glob in lane 21
    body_pose = full_pose[0, 3:66].reshape(21, 3)
    glob = full_pose[0, 0:3].reshape(1, 3)
    aa = jnp.concatenate([body_pose, glob], axis=0).T               # (3, 22)
    pose_rows = jnp.zeros((8, LANES), jnp.float32)
    pose_rows = pose_rows.at[0:3, 0:22].set(aa)
    pose_rows = pose_rows.at[3, 0:32].set(pose_embedding[0].astype(jnp.float32))

    data = jnp.concatenate([joint_rows, pose_rows], axis=0)         # (16,128)

    # scalar control flags (computed outside the kernel, passed via SMEM)
    rh_any = jnp.any(conf[46:67] > 0)
    lower_conf = conf[jnp.asarray(list(LOWER_BODY_JOINTS))]
    standing_on = jnp.logical_not(jnp.any(lower_conf != 0))
    flags = jnp.stack([rh_any, standing_on]).astype(jnp.int32)      # (2,)

    # TODO(synk): for batch > 1 add a batch grid axis with
    #             dimension_semantics=("parallel",) to occupy both v7x TCs.
    out = pl.pallas_call(
        smplify_loss_kernel,
        out_shape=jax.ShapeDtypeStruct((1, 1), jnp.float32),
        in_specs=[
            pl.BlockSpec(memory_space=pltpu.MemorySpace.SMEM),   # flags
            pl.BlockSpec(memory_space=pltpu.MemorySpace.VMEM),   # data slab
            pl.BlockSpec(memory_space=pltpu.MemorySpace.VMEM),   # pair-selection slab
        ],
        out_specs=pl.BlockSpec(memory_space=pltpu.MemorySpace.SMEM),
    )(flags, data, jnp.asarray(S_COMBINED))
    return out[0, 0]


# ----------------------- pure-JAX reference (torch-style) ---------------------
def smplify_loss_reference(joints3d, gt_joints, joints_conf, joint_weights,
                           full_pose, pose_embedding):
    j3 = joints3d[0]
    gt = gt_joints[0]
    conf = joints_conf[0]
    jw = joint_weights[0]

    z = j3[:, 2:3] + CAM_TZ
    proj = FOCAL * j3[:, 0:2] / z + CENTER
    w = (jw * conf)[:, None]
    d = gt - proj
    joint_loss = jnp.sum(w ** 2 * _gmof(d)) * DATA_WEIGHT ** 2

    bone_loss = 0.0
    if BONEORIENTATION_LOSS:
        p1 = np.array([a for a, _ in BODY_PAIRS])
        p2 = np.array([b for _, b in BODY_PAIRS])
        bone_loss += jnp.sum(_gmof(d[p1] - d[p2])) * DATA_WEIGHT ** 2
        if bool(jnp.any(conf[46:67] > 0)):
            p1 = np.array([a for a, _ in RHAND_PAIRS])
            p2 = np.array([b for _, b in RHAND_PAIRS])
            bone_loss += jnp.sum(_gmof(d[p1] - d[p2])) * DATA_WEIGHT ** 2

    pprior_loss = jnp.sum(pose_embedding ** 2) * BODY_POSE_WEIGHT ** 2

    body_pose_flat = full_pose[0, 3:66]
    idxs = np.array([52, 55, 9, 12])
    signs = np.array([1.0, -1.0, -1.0, -1.0], np.float32)
    angle_prior_loss = jnp.sum(jnp.exp(body_pose_flat[idxs] * signs) ** 2) \
        * BENDING_PRIOR_WEIGHT

    valid = [j for j in LOWER_BODY_JOINTS if float(conf[j]) != 0.0]
    standing_loss = 0.0
    if not valid:
        body_pose = body_pose_flat.reshape(21, 3)
        stand = body_pose.at[: (45 // 3), :].set(0.0)
        standing_loss = _l2loss_6d(body_pose, stand, STANDING_WEIGHT)
        glob = full_pose[0, 0:3].reshape(1, 3)
        no_rot = jnp.array([[math.pi, 0.0, 0.0]], jnp.float32)
        standing_loss += _l2loss_6d(glob, no_rot, STANDING_WEIGHT ** 2)

    return joint_loss + pprior_loss + bone_loss + angle_prior_loss + standing_loss


# ----------------------------------- main --------------------------------------
if __name__ == "__main__":
    key = jax.random.PRNGKey(0)
    k1, k2, k3, k4, k5, k6 = jax.random.split(key, 6)

    joints3d = 0.3 * jax.random.normal(k1, (1, NUM_JOINTS, 3), jnp.float32)
    gt_joints = 224.0 * jax.random.uniform(k2, (1, NUM_JOINTS, 2), jnp.float32)
    joints_conf = jax.random.uniform(k3, (1, NUM_JOINTS), jnp.float32)
    # zero lower-body confidences to exercise the standing-prior branch
    joints_conf = joints_conf.at[:, np.array(LOWER_BODY_JOINTS)].set(0.0)
    joint_weights = jax.random.uniform(k4, (1, NUM_JOINTS), jnp.float32)
    full_pose = 0.2 * jax.random.normal(k5, (1, 165), jnp.float32)
    pose_embedding = 0.5 * jax.random.normal(k6, (1, 32), jnp.float32)

    loss = jax.block_until_ready(
        smplify_loss_pallas(joints3d, gt_joints, joints_conf, joint_weights,
                            full_pose, pose_embedding))
    ref = jax.block_until_ready(
        smplify_loss_reference(joints3d, gt_joints, joints_conf, joint_weights,
                               full_pose, pose_embedding))

    rel = abs(float(loss) - float(ref)) / (abs(float(ref)) + 1e-6)
    if rel > 2e-3:
        raise AssertionError(f"mismatch: pallas={float(loss)} ref={float(ref)}")
    print("KERNEL_OK")
</pallas_src>

<mosaic_0001>
module attributes {stable_mosaic.version = 11 : i64} {
  func.func @smplify_loss_kernel(%arg0: memref<2xi32, #tpu.memory_space<smem>>, %arg1: memref<16x128xf32, #tpu.memory_space<vmem>>, %arg2: memref<16x128xf32, #tpu.memory_space<vmem>>, %arg3: memref<1x1xf32, #tpu.memory_space<smem>>) attributes {dimension_semantics = [], scalar_prefetch = 0 : i64, scratch_operands = 0 : i64, tpu.core_type = #tpu.core_type<tc>} {
    %c0 = arith.constant 0 : index
    %c0_0 = arith.constant 0 : index
    %0 = vector.load %arg1[%c0, %c0_0] : memref<16x128xf32, #tpu.memory_space<vmem>>, vector<1x128xf32>
    %c1 = arith.constant 1 : index
    %c0_1 = arith.constant 0 : index
    %1 = vector.load %arg1[%c1, %c0_1] : memref<16x128xf32, #tpu.memory_space<vmem>>, vector<1x128xf32>
    %c2 = arith.constant 2 : index
    %c0_2 = arith.constant 0 : index
    %2 = vector.load %arg1[%c2, %c0_2] : memref<16x128xf32, #tpu.memory_space<vmem>>, vector<1x128xf32>
    %c3 = arith.constant 3 : index
    %c0_3 = arith.constant 0 : index
    %3 = vector.load %arg1[%c3, %c0_3] : memref<16x128xf32, #tpu.memory_space<vmem>>, vector<1x128xf32>
    %c4 = arith.constant 4 : index
    %c0_4 = arith.constant 0 : index
    %4 = vector.load %arg1[%c4, %c0_4] : memref<16x128xf32, #tpu.memory_space<vmem>>, vector<1x128xf32>
    %c5 = arith.constant 5 : index
    %c0_5 = arith.constant 0 : index
    %5 = vector.load %arg1[%c5, %c0_5] : memref<16x128xf32, #tpu.memory_space<vmem>>, vector<1x128xf32>
    %c6 = arith.constant 6 : index
    %c0_6 = arith.constant 0 : index
    %6 = vector.load %arg1[%c6, %c0_6] : memref<16x128xf32, #tpu.memory_space<vmem>>, vector<1x128xf32>
    %c8 = arith.constant 8 : index
    %c0_7 = arith.constant 0 : index
    %7 = vector.load %arg1[%c8, %c0_7] : memref<16x128xf32, #tpu.memory_space<vmem>>, vector<3x128xf32>
    %c11 = arith.constant 11 : index
    %c0_8 = arith.constant 0 : index
    %8 = vector.load %arg1[%c11, %c0_8] : memref<16x128xf32, #tpu.memory_space<vmem>>, vector<1x128xf32>
    %cst = arith.constant 2.500000e+00 : f32
    %9 = vector.broadcast %cst : f32 to vector<1x128xf32>
    %10 = arith.addf %2, %9 : vector<1x128xf32>
    %cst_9 = arith.constant 5.000000e+02 : f32
    %11 = vector.broadcast %cst_9 : f32 to vector<1x128xf32>
    %12 = arith.mulf %11, %0 : vector<1x128xf32>
    %13 = arith.divf %12, %10 : vector<1x128xf32>
    %cst_10 = arith.constant 1.120000e+02 : f32
    %14 = vector.broadcast %cst_10 : f32 to vector<1x128xf32>
    %15 = arith.addf %13, %14 : vector<1x128xf32>
    %cst_11 = arith.constant 5.000000e+02 : f32
    %16 = vector.broadcast %cst_11 : f32 to vector<1x128xf32>
    %17 = arith.mulf %16, %1 : vector<1x128xf32>
    %18 = arith.divf %17, %10 : vector<1x128xf32>
    %cst_12 = arith.constant 1.120000e+02 : f32
    %19 = vector.broadcast %cst_12 : f32 to vector<1x128xf32>
    %20 = arith.addf %18, %19 : vector<1x128xf32>
    %21 = arith.subf %3, %15 : vector<1x128xf32>
    %22 = arith.subf %4, %20 : vector<1x128xf32>
    %23 = arith.mulf %5, %6 : vector<1x128xf32>
    %24 = arith.mulf %23, %23 : vector<1x128xf32>
    %25 = arith.mulf %21, %21 : vector<1x128xf32>
    %cst_13 = arith.constant 1.000000e+04 : f32
    %26 = vector.broadcast %cst_13 : f32 to vector<1x128xf32>
    %27 = arith.mulf %26, %25 : vector<1x128xf32>
    %cst_14 = arith.constant 1.000000e+04 : f32
    %28 = vector.broadcast %cst_14 : f32 to vector<1x128xf32>
    %29 = arith.addf %25, %28 : vector<1x128xf32>
    %30 = arith.divf %27, %29 : vector<1x128xf32>
    %31 = arith.mulf %22, %22 : vector<1x128xf32>
    %cst_15 = arith.constant 1.000000e+04 : f32
    %32 = vector.broadcast %cst_15 : f32 to vector<1x128xf32>
    %33 = arith.mulf %32, %31 : vector<1x128xf32>
    %cst_16 = arith.constant 1.000000e+04 : f32
    %34 = vector.broadcast %cst_16 : f32 to vector<1x128xf32>
    %35 = arith.addf %31, %34 : vector<1x128xf32>
    %36 = arith.divf %33, %35 : vector<1x128xf32>
    %37 = arith.addf %30, %36 : vector<1x128xf32>
    %38 = arith.mulf %24, %37 : vector<1x128xf32>
    %cst_17 = arith.constant 1.000000e+00 : f32
    %39 = vector.broadcast %cst_17 : f32 to vector<1x128xf32>
    %40 = arith.mulf %38, %39 : vector<1x128xf32>
    %41 = arith.mulf %8, %8 : vector<1x128xf32>
    %cst_18 = arith.constant 4.000000e+00 : f32
    %42 = vector.broadcast %cst_18 : f32 to vector<1x128xf32>
    %43 = arith.mulf %41, %42 : vector<1x128xf32>
    %44 = tpu.iota {dimensions = array<i32: 0>} : vector<3x128xi32>
    %45 = tpu.iota {dimensions = array<i32: 1>} : vector<3x128xi32>
    %false = arith.constant false
    %46 = vector.broadcast %false : i1 to vector<3x128xi1>
    %c1_i32 = arith.constant 1 : i32
    %47 = vector.broadcast %c1_i32 : i32 to vector<3x128xi32>
    %48 = arith.cmpi eq, %44, %47 : vector<3x128xi32>
    %c17_i32 = arith.constant 17 : i32
    %49 = vector.broadcast %c17_i32 : i32 to vector<3x128xi32>
    %50 = arith.cmpi eq, %45, %49 : vector<3x128xi32>
    %51 = arith.andi %48, %50 : vector<3x128xi1>
    %52 = arith.ori %46, %51 : vector<3x128xi1>
    %false_19 = arith.constant false
    %53 = vector.broadcast %false_19 : i1 to vector<3x128xi1>
    %c1_i32_20 = arith.constant 1 : i32
    %54 = vector.broadcast %c1_i32_20 : i32 to vector<3x128xi32>
    %55 = arith.cmpi eq, %44, %54 : vector<3x128xi32>
    %c18_i32 = arith.constant 18 : i32
    %56 = vector.broadcast %c18_i32 : i32 to vector<3x128xi32>
    %57 = arith.cmpi eq, %45, %56 : vector<3x128xi32>
    %58 = arith.andi %55, %57 : vector<3x128xi1>
    %59 = arith.ori %53, %58 : vector<3x128xi1>
    %c0_i32 = arith.constant 0 : i32
    %60 = vector.broadcast %c0_i32 : i32 to vector<3x128xi32>
    %61 = arith.cmpi eq, %44, %60 : vector<3x128xi32>
    %c3_i32 = arith.constant 3 : i32
    %62 = vector.broadcast %c3_i32 : i32 to vector<3x128xi32>
    %63 = arith.cmpi eq, %45, %62 : vector<3x128xi32>
    %64 = arith.andi %61, %63 : vector<3x128xi1>
    %65 = arith.ori %59, %64 : vector<3x128xi1>
    %c0_i32_21 = arith.constant 0 : i32
    %66 = vector.broadcast %c0_i32_21 : i32 to vector<3x128xi32>
    %67 = arith.cmpi eq, %44, %66 : vector<3x128xi32>
    %c4_i32 = arith.constant 4 : i32
    %68 = vector.broadcast %c4_i32 : i32 to vector<3x128xi32>
    %69 = arith.cmpi eq, %45, %68 : vector<3x128xi32>
    %70 = arith.andi %67, %69 : vector<3x128xi1>
    %71 = arith.ori %65, %70 : vector<3x128xi1>
    %cst_22 = arith.constant 1.000000e+00 : f32
    %cst_23 = arith.constant 0.000000e+00 : f32
    %72 = vector.broadcast %cst_22 : f32 to vector<3x128xf32>
    %73 = vector.broadcast %cst_23 : f32 to vector<3x128xf32>
    %74 = arith.select %52, %72, %73 : vector<3x128xi1>, vector<3x128xf32>
    %cst_24 = arith.constant 1.000000e+00 : f32
    %cst_25 = arith.constant 0.000000e+00 : f32
    %75 = vector.broadcast %cst_24 : f32 to vector<3x128xf32>
    %76 = vector.broadcast %cst_25 : f32 to vector<3x128xf32>
    %77 = arith.select %71, %75, %76 : vector<3x128xi1>, vector<3x128xf32>
    %78 = arith.subf %74, %77 : vector<3x128xf32>
    %79 = arith.ori %52, %71 : vector<3x128xi1>
    %cst_26 = arith.constant 1.000000e+00 : f32
    %cst_27 = arith.constant 0.000000e+00 : f32
    %80 = vector.broadcast %cst_26 : f32 to vector<3x128xf32>
    %81 = vector.broadcast %cst_27 : f32 to vector<3x128xf32>
    %82 = arith.select %79, %80, %81 : vector<3x128xi1>, vector<3x128xf32>
    %83 = arith.mulf %7, %78 : vector<3x128xf32>
    %84 = math.exp %83 : vector<3x128xf32>
    %85 = arith.mulf %84, %84 : vector<3x128xf32>
    %86 = arith.mulf %85, %82 : vector<3x128xf32>
    %cst_28 = arith.constant 3.170000e+00 : f32
    %87 = vector.broadcast %cst_28 : f32 to vector<3x128xf32>
    %88 = arith.mulf %86, %87 : vector<3x128xf32>
    %cst_29 = arith.constant dense<0.000000e+00> : vector<128xf32>
    %89 = vector.multi_reduction <add>, %88, %cst_29 [0] : vector<3x128xf32> to vector<128xf32>
    %90 = vector.shape_cast %89 : vector<128xf32> to vector<1x128xf32>
    %c0_30 = arith.constant 0 : index
    %c0_31 = arith.constant 0 : index
    %91 = vector.load %arg2[%c0_30, %c0_31] : memref<16x128xf32, #tpu.memory_space<vmem>>, vector<16x128xf32>
    %92 = vector.broadcast %21 : vector<1x128xf32> to vector<16x128xf32>
    %93 = arith.mulf %91, %92 : vector<16x128xf32>
    %cst_32 = arith.constant dense<0.000000e+00> : vector<16xf32>
    %94 = vector.multi_reduction <add>, %93, %cst_32 [1] : vector<16x128xf32> to vector<16xf32>
    %95 = vector.shape_cast %94 : vector<16xf32> to vector<16x1xf32>
    %96 = vector.broadcast %22 : vector<1x128xf32> to vector<16x128xf32>
    %97 = arith.mulf %91, %96 : vector<16x128xf32>
    %cst_33 = arith.constant dense<0.000000e+00> : vector<16xf32>
    %98 = vector.multi_reduction <add>, %97, %cst_33 [1] : vector<16x128xf32> to vector<16xf32>
    %99 = vector.shape_cast %98 : vector<16xf32> to vector<16x1xf32>
    %100 = arith.mulf %95, %95 : vector<16x1xf32>
    %cst_34 = arith.constant 1.000000e+04 : f32
    %101 = vector.broadcast %cst_34 : f32 to vector<16x1xf32>
    %102 = arith.mulf %101, %100 : vector<16x1xf32>
    %cst_35 = arith.constant 1.000000e+04 : f32
    %103 = vector.broadcast %cst_35 : f32 to vector<16x1xf32>
    %104 = arith.addf %100, %103 : vector<16x1xf32>
    %105 = arith.divf %102, %104 : vector<16x1xf32>
    %106 = arith.mulf %99, %99 : vector<16x1xf32>
    %cst_36 = arith.constant 1.000000e+04 : f32
    %107 = vector.broadcast %cst_36 : f32 to vector<16x1xf32>
    %108 = arith.mulf %107, %106 : vector<16x1xf32>
    %cst_37 = arith.constant 1.000000e+04 : f32
    %109 = vector.broadcast %cst_37 : f32 to vector<16x1xf32>
    %110 = arith.addf %106, %109 : vector<16x1xf32>
    %111 = arith.divf %108, %110 : vector<16x1xf32>
    %112 = arith.addf %105, %111 : vector<16x1xf32>
    %113 = tpu.iota {dimensions = array<i32: 0>} : vector<16x1xi32>
    %c8_i32 = arith.constant 8 : i32
    %114 = vector.broadcast %c8_i32 : i32 to vector<16x1xi32>
    %115 = arith.cmpi slt, %113, %114 : vector<16x1xi32>
    %116 = arith.extui %115 : vector<16x1xi1> to vector<16x1xi32>
    %117 = arith.sitofp %116 : vector<16x1xi32> to vector<16x1xf32>
    %c8_i32_38 = arith.constant 8 : i32
    %118 = vector.broadcast %c8_i32_38 : i32 to vector<16x1xi32>
    %119 = arith.cmpi sge, %113, %118 : vector<16x1xi32>
    %c13_i32 = arith.constant 13 : i32
    %120 = vector.broadcast %c13_i32 : i32 to vector<16x1xi32>
    %121 = arith.cmpi slt, %113, %120 : vector<16x1xi32>
    %122 = arith.andi %119, %121 : vector<16x1xi1>
    %123 = arith.extui %122 : vector<16x1xi1> to vector<16x1xi32>
    %124 = arith.sitofp %123 : vector<16x1xi32> to vector<16x1xf32>
    %c0_39 = arith.constant 0 : index
    %125 = memref.load %arg0[%c0_39] : memref<2xi32, #tpu.memory_space<smem>>
    %c0_i32_40 = arith.constant 0 : i32
    %126 = arith.cmpi sgt, %125, %c0_i32_40 : i32
    %127 = arith.extui %126 : i1 to i32
    %128 = arith.sitofp %127 : i32 to f32
    %129 = vector.broadcast %128 : f32 to vector<16x1xf32>
    %130 = arith.mulf %129, %124 : vector<16x1xf32>
    %131 = arith.addf %117, %130 : vector<16x1xf32>
    %132 = arith.mulf %112, %131 : vector<16x1xf32>
    %133 = vector.shape_cast %132 : vector<16x1xf32> to vector<1x16x1xf32>
    %cst_41 = arith.constant dense<0.000000e+00> : vector<1xf32>
    %134 = vector.multi_reduction <add>, %133, %cst_41 [1, 2] : vector<1x16x1xf32> to vector<1xf32>
    %135 = vector.shape_cast %134 : vector<1xf32> to vector<1x1x1xf32>
    %136 = vector.extract %135[0, 0, 0] : f32 from vector<1x1x1xf32>
    %cst_42 = arith.constant 1.000000e+00 : f32
    %137 = arith.mulf %136, %cst_42 : f32
    %138 = arith.addf %40, %43 : vector<1x128xf32>
    %139 = arith.addf %138, %90 : vector<1x128xf32>
    %140 = vector.shape_cast %139 : vector<1x128xf32> to vector<1x1x128xf32>
    %cst_43 = arith.constant dense<0.000000e+00> : vector<1xf32>
    %141 = vector.multi_reduction <add>, %140, %cst_43 [1, 2] : vector<1x1x128xf32> to vector<1xf32>
    %142 = vector.shape_cast %141 : vector<1xf32> to vector<1x1x1xf32>
    %143 = vector.extract %142[0, 0, 0] : f32 from vector<1x1x1xf32>
    %144 = arith.addf %143, %137 : f32
    %c0_44 = arith.constant 0 : index
    %c0_45 = arith.constant 0 : index
    %145 = memref.load %arg3[%c0_44, %c0_45] : memref<1x1xf32, #tpu.memory_space<smem>>
    memref.store %144, %arg3[%c0_44, %c0_45] : memref<1x1xf32, #tpu.memory_space<smem>>
    %c1_46 = arith.constant 1 : index
    %146 = memref.load %arg0[%c1_46] : memref<2xi32, #tpu.memory_space<smem>>
    %c0_i32_47 = arith.constant 0 : i32
    %147 = arith.cmpi ne, %146, %c0_i32_47 : i32
    %148 = arith.extui %147 : i1 to i32
    %c0_i32_48 = arith.constant 0 : i32
    %149 = arith.cmpi ne, %148, %c0_i32_48 : i32
    scf.if %149 {
      %150 = tpu.iota {dimensions = array<i32: 1>} : vector<1x128xi32>
      %c15_i32 = arith.constant 15 : i32
      %151 = vector.broadcast %c15_i32 : i32 to vector<1x128xi32>
      %152 = arith.cmpi sge, %150, %151 : vector<1x128xi32>
      %c20_i32 = arith.constant 20 : i32
      %153 = vector.broadcast %c20_i32 : i32 to vector<1x128xi32>
      %154 = arith.cmpi sle, %150, %153 : vector<1x128xi32>
      %155 = arith.andi %152, %154 : vector<1x128xi1>
      %156 = arith.extui %155 : vector<1x128xi1> to vector<1x128xi32>
      %157 = arith.sitofp %156 : vector<1x128xi32> to vector<1x128xf32>
      %158 = tpu.iota {dimensions = array<i32: 0>} : vector<3x128xi32>
      %159 = tpu.iota {dimensions = array<i32: 1>} : vector<3x128xi32>
      %c0_i32_49 = arith.constant 0 : i32
      %160 = vector.broadcast %c0_i32_49 : i32 to vector<3x128xi32>
      %161 = arith.cmpi eq, %158, %160 : vector<3x128xi32>
      %c21_i32 = arith.constant 21 : i32
      %162 = vector.broadcast %c21_i32 : i32 to vector<3x128xi32>
      %163 = arith.cmpi eq, %159, %162 : vector<3x128xi32>
      %164 = arith.andi %161, %163 : vector<3x128xi1>
      %cst_50 = arith.constant 3.14159274 : f32
      %cst_51 = arith.constant 0.000000e+00 : f32
      %165 = vector.broadcast %cst_50 : f32 to vector<3x128xf32>
      %166 = vector.broadcast %cst_51 : f32 to vector<3x128xf32>
      %167 = arith.select %164, %165, %166 : vector<3x128xi1>, vector<3x128xf32>
      %168 = vector.broadcast %157 : vector<1x128xf32> to vector<3x128xf32>
      %169 = arith.mulf %7, %168 : vector<3x128xf32>
      %170 = arith.addf %169, %167 : vector<3x128xf32>
      %171 = vector.extract_strided_slice %7 {offsets = [0, 0], sizes = [1, 128], strides = [1, 1]} : vector<3x128xf32> to vector<1x128xf32>
      %172 = vector.extract_strided_slice %7 {offsets = [1, 0], sizes = [1, 128], strides = [1, 1]} : vector<3x128xf32> to vector<1x128xf32>
      %173 = vector.extract_strided_slice %7 {offsets = [2, 0], sizes = [1, 128], strides = [1, 1]} : vector<3x128xf32> to vector<1x128xf32>
      %174 = arith.mulf %171, %171 : vector<1x128xf32>
      %175 = arith.mulf %172, %172 : vector<1x128xf32>
      %176 = arith.addf %174, %175 : vector<1x128xf32>
      %177 = arith.mulf %173, %173 : vector<1x128xf32>
      %178 = arith.addf %176, %177 : vector<1x128xf32>
      %179 = math.sqrt %178 : vector<1x128xf32>
      %cst_52 = arith.constant 5.000000e-01 : f32
      %180 = vector.broadcast %cst_52 : f32 to vector<1x128xf32>
      %181 = arith.mulf %180, %179 : vector<1x128xf32>
      %cst_53 = arith.constant 9.99999997E-7 : f32
      %182 = vector.broadcast %cst_53 : f32 to vector<1x128xf32>
      %183 = arith.cmpf olt, %179, %182 : vector<1x128xf32>
      %cst_54 = arith.constant 1.000000e+00 : f32
      %184 = vector.broadcast %cst_54 : f32 to vector<1x128xf32>
      %185 = arith.select %183, %184, %179 : vector<1x128xi1>, vector<1x128xf32>
      %cst_55 = arith.constant 4.800000e+01 : f32
      %186 = vector.broadcast %cst_55 : f32 to vector<1x128xf32>
      %187 = arith.divf %178, %186 : vector<1x128xf32>
      %cst_56 = arith.constant 5.000000e-01 : f32
      %188 = vector.broadcast %cst_56 : f32 to vector<1x128xf32>
      %189 = arith.subf %188, %187 : vector<1x128xf32>
      %190 = math.sin %181 : vector<1x128xf32>
      %191 = arith.divf %190, %185 : vector<1x128xf32>
      %192 = arith.select %183, %189, %191 : vector<1x128xi1>, vector<1x128xf32>
      %193 = math.cos %181 : vector<1x128xf32>
      %194 = arith.mulf %171, %192 : vector<1x128xf32>
      %195 = arith.mulf %172, %192 : vector<1x128xf32>
      %196 = arith.mulf %173, %192 : vector<1x128xf32>
      %197 = arith.mulf %193, %193 : vector<1x128xf32>
      %198 = arith.mulf %194, %194 : vector<1x128xf32>
      %199 = arith.addf %197, %198 : vector<1x128xf32>
      %200 = arith.mulf %195, %195 : vector<1x128xf32>
      %201 = arith.addf %199, %200 : vector<1x128xf32>
      %202 = arith.mulf %196, %196 : vector<1x128xf32>
      %203 = arith.addf %201, %202 : vector<1x128xf32>
      %cst_57 = arith.constant 2.000000e+00 : f32
      %204 = vector.broadcast %cst_57 : f32 to vector<1x128xf32>
      %205 = arith.divf %204, %203 : vector<1x128xf32>
      %206 = arith.mulf %195, %195 : vector<1x128xf32>
      %207 = arith.mulf %196, %196 : vector<1x128xf32>
      %208 = arith.addf %206, %207 : vector<1x128xf32>
      %209 = arith.mulf %205, %208 : vector<1x128xf32>
      %cst_58 = arith.constant 1.000000e+00 : f32
      %210 = vector.broadcast %cst_58 : f32 to vector<1x128xf32>
      %211 = arith.subf %210, %209 : vector<1x128xf32>
      %212 = arith.mulf %194, %195 : vector<1x128xf32>
      %213 = arith.mulf %196, %193 : vector<1x128xf32>
      %214 = arith.subf %212, %213 : vector<1x128xf32>
      %215 = arith.mulf %205, %214 : vector<1x128xf32>
      %216 = arith.mulf %194, %196 : vector<1x128xf32>
      %217 = arith.mulf %195, %193 : vector<1x128xf32>
      %218 = arith.addf %216, %217 : vector<1x128xf32>
      %219 = arith.mulf %205, %218 : vector<1x128xf32>
      %220 = arith.mulf %194, %195 : vector<1x128xf32>
      %221 = arith.mulf %196, %193 : vector<1x128xf32>
      %222 = arith.addf %220, %221 : vector<1x128xf32>
      %223 = arith.mulf %205, %222 : vector<1x128xf32>
      %224 = arith.mulf %194, %194 : vector<1x128xf32>
      %225 = arith.mulf %196, %196 : vector<1x128xf32>
      %226 = arith.addf %224, %225 : vector<1x128xf32>
      %227 = arith.mulf %205, %226 : vector<1x128xf32>
      %cst_59 = arith.constant 1.000000e+00 : f32
      %228 = vector.broadcast %cst_59 : f32 to vector<1x128xf32>
      %229 = arith.subf %228, %227 : vector<1x128xf32>
      %230 = arith.mulf %195, %196 : vector<1x128xf32>
      %231 = arith.mulf %194, %193 : vector<1x128xf32>
      %232 = arith.subf %230, %231 : vector<1x128xf32>
      %233 = arith.mulf %205, %232 : vector<1x128xf32>
      %234 = vector.extract_strided_slice %170 {offsets = [0, 0], sizes = [1, 128], strides = [1, 1]} : vector<3x128xf32> to vector<1x128xf32>
      %235 = vector.extract_strided_slice %170 {offsets = [1, 0], sizes = [1, 128], strides = [1, 1]} : vector<3x128xf32> to vector<1x128xf32>
      %236 = vector.extract_strided_slice %170 {offsets = [2, 0], sizes = [1, 128], strides = [1, 1]} : vector<3x128xf32> to vector<1x128xf32>
      %237 = arith.mulf %234, %234 : vector<1x128xf32>
      %238 = arith.mulf %235, %235 : vector<1x128xf32>
      %239 = arith.addf %237, %238 : vector<1x128xf32>
      %240 = arith.mulf %236, %236 : vector<1x128xf32>
      %241 = arith.addf %239, %240 : vector<1x128xf32>
      %242 = math.sqrt %241 : vector<1x128xf32>
      %cst_60 = arith.constant 5.000000e-01 : f32
      %243 = vector.broadcast %cst_60 : f32 to vector<1x128xf32>
      %244 = arith.mulf %243, %242 : vector<1x128xf32>
      %cst_61 = arith.constant 9.99999997E-7 : f32
      %245 = vector.broadcast %cst_61 : f32 to vector<1x128xf32>
      %246 = arith.cmpf olt, %242, %245 : vector<1x128xf32>
      %cst_62 = arith.constant 1.000000e+00 : f32
      %247 = vector.broadcast %cst_62 : f32 to vector<1x128xf32>
      %248 = arith.select %246, %247, %242 : vector<1x128xi1>, vector<1x128xf32>
      %cst_63 = arith.constant 4.800000e+01 : f32
      %249 = vector.broadcast %cst_63 : f32 to vector<1x128xf32>
      %250 = arith.divf %241, %249 : vector<1x128xf32>
      %cst_64 = arith.constant 5.000000e-01 : f32
      %251 = vector.broadcast %cst_64 : f32 to vector<1x128xf32>
      %252 = arith.subf %251, %250 : vector<1x128xf32>
      %253 = math.sin %244 : vector<1x128xf32>
      %254 = arith.divf %253, %248 : vector<1x128xf32>
      %255 = arith.select %246, %252, %254 : vector<1x128xi1>, vector<1x128xf32>
      %256 = math.cos %244 : vector<1x128xf32>
      %257 = arith.mulf %234, %255 : vector<1x128xf32>
      %258 = arith.mulf %235, %255 : vector<1x128xf32>
      %259 = arith.mulf %236, %255 : vector<1x128xf32>
      %260 = arith.mulf %256, %256 : vector<1x128xf32>
      %261 = arith.mulf %257, %257 : vector<1x128xf32>
      %262 = arith.addf %260, %261 : vector<1x128xf32>
      %263 = arith.mulf %258, %258 : vector<1x128xf32>
      %264 = arith.addf %262, %263 : vector<1x128xf32>
      %265 = arith.mulf %259, %259 : vector<1x128xf32>
      %266 = arith.addf %264, %265 : vector<1x128xf32>
      %cst_65 = arith.constant 2.000000e+00 : f32
      %267 = vector.broadcast %cst_65 : f32 to vector<1x128xf32>
      %268 = arith.divf %267, %266 : vector<1x128xf32>
      %269 = arith.mulf %258, %258 : vector<1x128xf32>
      %270 = arith.mulf %259, %259 : vector<1x128xf32>
      %271 = arith.addf %269, %270 : vector<1x128xf32>
      %272 = arith.mulf %268, %271 : vector<1x128xf32>
      %cst_66 = arith.constant 1.000000e+00 : f32
      %273 = vector.broadcast %cst_66 : f32 to vector<1x128xf32>
      %274 = arith.subf %273, %272 : vector<1x128xf32>
      %275 = arith.mulf %257, %258 : vector<1x128xf32>
      %276 = arith.mulf %259, %256 : vector<1x128xf32>
      %277 = arith.subf %275, %276 : vector<1x128xf32>
      %278 = arith.mulf %268, %277 : vector<1x128xf32>
      %279 = arith.mulf %257, %259 : vector<1x128xf32>
      %280 = arith.mulf %258, %256 : vector<1x128xf32>
      %281 = arith.addf %279, %280 : vector<1x128xf32>
      %282 = arith.mulf %268, %281 : vector<1x128xf32>
      %283 = arith.mulf %257, %258 : vector<1x128xf32>
      %284 = arith.mulf %259, %256 : vector<1x128xf32>
      %285 = arith.addf %283, %284 : vector<1x128xf32>
      %286 = arith.mulf %268, %285 : vector<1x128xf32>
      %287 = arith.mulf %257, %257 : vector<1x128xf32>
      %288 = arith.mulf %259, %259 : vector<1x128xf32>
      %289 = arith.addf %287, %288 : vector<1x128xf32>
      %290 = arith.mulf %268, %289 : vector<1x128xf32>
      %cst_67 = arith.constant 1.000000e+00 : f32
      %291 = vector.broadcast %cst_67 : f32 to vector<1x128xf32>
      %292 = arith.subf %291, %290 : vector<1x128xf32>
      %293 = arith.mulf %258, %259 : vector<1x128xf32>
      %294 = arith.mulf %257, %256 : vector<1x128xf32>
      %295 = arith.subf %293, %294 : vector<1x128xf32>
      %296 = arith.mulf %268, %295 : vector<1x128xf32>
      %cst_68 = arith.constant 0.000000e+00 : f32
      %297 = vector.broadcast %cst_68 : f32 to vector<1x128xf32>
      %298 = arith.subf %211, %274 : vector<1x128xf32>
      %299 = arith.mulf %298, %298 : vector<1x128xf32>
      %300 = arith.addf %297, %299 : vector<1x128xf32>
      %301 = arith.subf %215, %278 : vector<1x128xf32>
      %302 = arith.mulf %301, %301 : vector<1x128xf32>
      %303 = arith.addf %300, %302 : vector<1x128xf32>
      %304 = arith.subf %219, %282 : vector<1x128xf32>
      %305 = arith.mulf %304, %304 : vector<1x128xf32>
      %306 = arith.addf %303, %305 : vector<1x128xf32>
      %307 = arith.subf %223, %286 : vector<1x128xf32>
      %308 = arith.mulf %307, %307 : vector<1x128xf32>
      %309 = arith.addf %306, %308 : vector<1x128xf32>
      %310 = arith.subf %229, %292 : vector<1x128xf32>
      %311 = arith.mulf %310, %310 : vector<1x128xf32>
      %312 = arith.addf %309, %311 : vector<1x128xf32>
      %313 = arith.subf %233, %296 : vector<1x128xf32>
      %314 = arith.mulf %313, %313 : vector<1x128xf32>
      %315 = arith.addf %312, %314 : vector<1x128xf32>
      %c21_i32_69 = arith.constant 21 : i32
      %316 = vector.broadcast %c21_i32_69 : i32 to vector<1x128xi32>
      %317 = arith.cmpi slt, %150, %316 : vector<1x128xi32>
      %c21_i32_70 = arith.constant 21 : i32
      %318 = vector.broadcast %c21_i32_70 : i32 to vector<1x128xi32>
      %319 = arith.cmpi eq, %150, %318 : vector<1x128xi32>
      %cst_71 = arith.constant 6.250000e+10 : f32
      %cst_72 = arith.constant 0.000000e+00 : f32
      %320 = vector.broadcast %cst_71 : f32 to vector<1x128xf32>
      %321 = vector.broadcast %cst_72 : f32 to vector<1x128xf32>
      %322 = arith.select %319, %320, %321 : vector<1x128xi1>, vector<1x128xf32>
      %cst_73 = arith.constant 2.500000e+05 : f32
      %323 = vector.broadcast %cst_73 : f32 to vector<1x128xf32>
      %324 = arith.select %317, %323, %322 : vector<1x128xi1>, vector<1x128xf32>
      %c0_74 = arith.constant 0 : index
      %c0_75 = arith.constant 0 : index
      %325 = memref.load %arg3[%c0_74, %c0_75] : memref<1x1xf32, #tpu.memory_space<smem>>
      %326 = arith.mulf %315, %324 : vector<1x128xf32>
      %327 = vector.shape_cast %326 : vector<1x128xf32> to vector<1x1x128xf32>
      %cst_76 = arith.constant dense<0.000000e+00> : vector<1xf32>
      %328 = vector.multi_reduction <add>, %327, %cst_76 [1, 2] : vector<1x1x128xf32> to vector<1xf32>
      %329 = vector.shape_cast %328 : vector<1xf32> to vector<1x1x1xf32>
      %330 = vector.extract %329[0, 0, 0] : f32 from vector<1x1x1xf32>
      %331 = arith.addf %325, %330 : f32
      %c0_77 = arith.constant 0 : index
      %c0_78 = arith.constant 0 : index
      %332 = memref.load %arg3[%c0_77, %c0_78] : memref<1x1xf32, #tpu.memory_space<smem>>
      memref.store %331, %arg3[%c0_77, %c0_78] : memref<1x1xf32, #tpu.memory_space<smem>>
    } else {
    }
    return
  }
}

</mosaic_0001>

<bundles_post_ra>
// kernel: tpu_custom_call.1
= control target key start
LH: loop header
LB: loop body
LE: loop exit
PB: predicated region body
PF: predicated region fallthrough
CT: control target
= control target key end

     0   :  { %8 = vsyncpa [#allocation4], 0  ;;  %s1886_s0 = inlined_call_operand.hbm [shape: s32[2], index: 0, kind: input, shape index: {}]   ;;  %s1887_s1 = inlined_call_operand.hbm [shape: f32[16,128], index: 1, kind: input, shape index: {}]   ;;  %s1888_s2 = inlined_call_operand.hbm [shape: f32[16,128], index: 2, kind: input, shape index: {}]   ;;  %s1889_s3 = inlined_call_operand.hbm [shape: f32[1,1], index: 3, kind: output, shape index: {}]  }
   0x1   :  { %9 = vsyncpa [#allocation3], 0 }
   0x2   :  { %10 = vsyncpa [#allocation8], 0 }
   0x3   :  { %11 = vsyncpa [#allocation5], 0  ;;  %s17_s14 = sshll.u32 %s1886_s0, 4  ;;  %s25_s17 = sshll.u32 %s1887_s1, 4  ;;  %s18_s14 = int_to_ptr.hbm [resolvable:$true] %s17_s14  ;;  %s26_s17 = int_to_ptr.hbm [resolvable:$true] %s25_s17 }
   0x4   :  { %s1411_s18 = smov [#allocation2]   ;;  %s1412_s19 = smov [#allocation6]  }
   0x5   :  { %20 = dma.hbm_to_smem %s18_s14, 16, %s1411_s18, [#allocation4]  }
   0x6   :  { %s27_s20 = sshll.u32 %s1412_s19, 4  ;;  %s1413_s21 = smov 128   ;;  %s28_s20 = int_to_ptr.vmem [resolvable:$true] %s27_s20 }
   0x7   :  { %s1414_s22 = smov 8   ;;  %s38_s25 = sshll.u32 %s1888_s2, 4  ;;  %s39_s25 = int_to_ptr.hbm [resolvable:$true] %s38_s25 }
   0x8   :  { %33 = dma.hbm_to_vmem [thread:$0]  %s26_s17, 256, %s28_s20, [#allocation3], %s1413_s21, %s1413_s21, %s1414_s22  }
   0x9   :  { %s1415_s0 = smov [#allocation7]  }
   0xa   :  { %s40_s26 = sshll.u32 %s1415_s0, 4  ;;  %s41_s26 = int_to_ptr.vmem [resolvable:$true] %s40_s26 }
   0xb   :  { %46 = dma.hbm_to_vmem [thread:$0]  %s39_s25, 256, %s41_s26, [#allocation8], %s1413_s21, %s1413_s21, %s1414_s22  }
   0xc   :  { %1403 = dma.done.wait [#allocation4], 16  }
   0xd   :  { %1404 = vsyncadd [#allocation4], 4294967280 }
   0xe   :  { %1405 = dma.done.wait [#allocation3], 256  }
   0xf   :  { %1406 = vsyncadd [#allocation3], 4294967040 }
  0x10   :  { %1407 = dma.done.wait [#allocation8], 256  }
  0x11   :  { %1408 = vsyncadd [#allocation8], 4294967040 }
  0x12   :  { %59 = sfence }
  0x13   :  { %v62_v0 = vld [vmem:[#allocation6 + $0x2] sm:$0x1]  ;;  %v61_v7 = vld [vmem:[#allocation6 + $0x1] sm:$0x1]  ;;  %v60_v8 = vld [vmem:[#allocation6] sm:$0x1]  ;;  %v134_v36 = vlaneseq }
  0x14   :  { %v69_v1 = vadd.f32 2.5, %v62_v0  ;;  %v87_v12 = vmul.f32 500.0, %v61_v7  ;;  %v70_v13 = vmul.f32 500.0, %v60_v8  ;;  %v64_v18 = vld [vmem:[#allocation6 + $0x4] sm:$0x1]  ;;  %v169_v24 = vld [vmem:[#allocation7] sm:$0xff] }
  0x15   :  { %v63_v19 = vld [vmem:[#allocation6 + $0x3] sm:$0x1]  ;;  %v170_v29 = vld [vmem:[#allocation7 + $0x8] sm:$0xff]  ;;  %v1456_v37 = vshrl.u32 %v134_v36, 7  ;;  %v1458_v38 = vand.u32 127, %v134_v36  ;;  %v1416_v44 = vmov 0.0  }
  0x16   :  { %1301 = vrcp.f32 %v69_v1  ;;  %v82_v4 = vand.u32 2147483648, %v69_v1  ;;  %vm76_vm0 = vweird.f32 %v69_v1  ;;  %v80_v6 = vand.u32 2147483647, %v69_v1  ;;  %v1484_v48 = vld [vmem:[#allocation6 + $0x8] sm:$0x7]  ;;  %s1487_s1 = sld [smem:[#allocation2]] }
  0x17   :  { %vm138_vm4 = vcmp.eq.s32.totalorder %v1456_v37, 1  ;;  %vm141_vm5 = vcmp.eq.s32.totalorder %v1458_v38, 18  ;;  %vm143_vm6 = vcmp.eq.s32.totalorder %v1456_v37, 0  ;;  %vm144_vm7 = vcmp.eq.s32.totalorder %v1458_v38, 3  ;;  %s1264_s28 = sld [smem:[#allocation2 + $0x1]] }
  0x18   :  { %v83_v10 = vor.u32 1.1754944e-38, %v82_v4  ;;  %vm81_vm3 = vcmp.eq.f32.partialorder %v80_v6, 8.507059e+37  ;;  %vm142_vm8 = vmand %vm138_vm4, %vm141_vm5  ;;  %vm139_vm9 = vcmp.eq.s32.totalorder %v1458_v38, 17  ;;  %vm147_vm11 = vcmp.eq.s32.totalorder %v1458_v38, 4 }
  0x19   :  { %vm145_vm10 = vmand %vm143_vm6, %vm144_vm7 }
  0x1a   :  { %vm1468_vm12 = vmand %vm138_vm4, %vm139_vm9 }
  0x1b   :  { %vm146_vm13 = vmor %vm142_vm8, %vm145_vm10  ;;  %v150_v45 = vsel %vm1468_vm12, 1.0, %v1416_v44  ;;  %vm161_vm10 = vcmask 1042432  }
  0x1c   :  { %v1302_v2 = vpop.eup %1301  ;;  %vm148_vm14 = vmand %vm143_vm6, %vm147_vm11  ;;  %p277_p0 = scmp.gt.s32.totalorder %s1487_s1, 0 }
  0x1d   :  { %v72_v3 = vmul.f32 %v1302_v2, %v69_v1  ;;  %vm77_vm1 = vweird.f32 %v1302_v2  ;;  %vm1477_vm15 = vmor %vm146_vm13, %vm148_vm14  ;;  %p1265_p1 = scmp.eq.s32.totalorder %s1264_s28, 0 }
  0x1e   :  { %vm78_vm2 = vmor %vm76_vm0, %vm77_vm1  ;;  %v151_v47 = vsel %vm1477_vm15, 1.0, %v1416_v44  ;;  %s278_s2 = scalar_select %p277_p0, 1, 0 }
  0x1f   :  { %v73_v5 = vsub.f32 1.0, %v72_v3  ;;  %v152_v50 = vsub.f32 %v150_v45, %v151_v47  ;;  %vm153_vm9 = vmor %vm1468_vm12, %vm1477_vm15 }
  0x20   :  { %s279_s27 = scvt.s32.f32 %s278_s2 }
  0x21   :  { %v74_v9 = vmul.f32 %v1302_v2, %v73_v5  ;;  %v155_v52 = vmul.f32 %v152_v50, %v1484_v48 }
  0x23   :  { %v75_v11 = vadd.f32 %v1302_v2, %v74_v9  ;;  %v156_v54 = vmul.f32 1.442695, %v155_v52 }
  0x25   :  { %v79_v14 = vsel %vm78_vm2, %v1302_v2, %v75_v11 }
  0x26   :  { %v84_v15 = vsel %vm81_vm3, %v83_v10, %v79_v14 }
  0x27   :  { %v88_v16 = vmul.f32 %v87_v12, %v84_v15  ;;  %v85_v17 = vmul.f32 %v84_v15, %v70_v13  ;;  %v154_v13 = vsel %vm153_vm9, 1.0, %v1416_v44 }
  0x29   :  { %v89_v20 = vadd.f32 112.0, %v88_v16  ;;  %v86_v21 = vadd.f32 112.0, %v85_v17 }
  0x2b   :  { %v91_v22 = vsub.f32 %v64_v18, %v89_v20  ;;  %v90_v23 = vsub.f32 %v63_v19, %v86_v21  ;;  %v1501_v21 = vstv %s279_s27 }
  0x2d   :  { %v178_v25 = vperm.slane %v91_v22, 0  ;;  %v171_v26 = vperm.slane %v90_v23, 0  ;;  %v112_v32 = vmul.f32 %v91_v22, %v91_v22  ;;  %v94_v33 = vmul.f32 %v90_v23, %v90_v23 }
  0x2f   :  { %v179_v27 = vmul.f32 %v178_v25, %v169_v24  ;;  %v172_v28 = vmul.f32 %v171_v26, %v169_v24  ;;  %v180_v30 = vmul.f32 %v178_v25, %v170_v29  ;;  %v173_v31 = vmul.f32 %v171_v26, %v170_v29 }
  0x30   :  { %v114_v34 = vadd.f32 10000.0, %v112_v32  ;;  %v96_v35 = vadd.f32 10000.0, %v94_v33  ;;  %v113_v4 = vmul.f32 10000.0, %v112_v32  ;;  %v95_v6 = vmul.f32 10000.0, %v94_v33 }
  0x31   :  { %181 = vadd.xlane.f32.xlu1 %v179_v27  ;;  %174 = vadd.xlane.f32.xlu0 %v172_v28  ;;  %v259_v26 = vadd.s32 8, %v1456_v37 }
  0x32   :  { %1303 = vrcp.f32 %v114_v34  ;;  %vm120_vm0 = vweird.f32 %v114_v34  ;;  %v126_v56 = vand.u32 2147483648, %v114_v34  ;;  %vm102_vm2 = vweird.f32 %v96_v35 }
  0x33   :  { %1305 = vrcp.f32 %v96_v35  ;;  %v124_v58 = vand.u32 2147483647, %v114_v34  ;;  %v108_v59 = vand.u32 2147483648, %v96_v35  ;;  %v106_v61 = vand.u32 2147483647, %v96_v35 }
  0x34   :  { %1307 = vpow2.f32 %v156_v54  ;;  %v127_v63 = vor.u32 1.1754944e-38, %v126_v56  ;;  %vm269_vm11 = vcmp.lt.s32.totalorder %v259_v26, 13  ;;  %v66_v54 = vld [vmem:[#allocation6 + $0x6] sm:$0x1] }
  0x35   :  { %vm125_vm7 = vcmp.eq.f32.partialorder %v124_v58, 8.507059e+37  ;;  %v109_v2 = vor.u32 1.1754944e-38, %v108_v59  ;;  %vm107_vm8 = vcmp.eq.f32.partialorder %v106_v61, 8.507059e+37  ;;  %v68_v58 = vld [vmem:[#allocation6 + $0xb] sm:$0x1] }
  0x38   :  { %v1304_v39 = vpop.eup %1303 }
  0x39   :  { %183 = vadd.xlane.f32.xlu1 %v180_v30  ;;  %176 = vadd.xlane.f32.xlu0 %v173_v31  ;;  %v1306_v40 = vpop.eup %1305  ;;  %v116_v42 = vmul.f32 %v1304_v39, %v114_v34  ;;  %vm121_vm1 = vweird.f32 %v1304_v39  ;;  %v281_v30 = vmul.f32 0.0, %v1501_v21 }
  0x3a   :  { %v98_v43 = vmul.f32 %v1306_v40, %v96_v35  ;;  %vm103_vm3 = vweird.f32 %v1306_v40  ;;  %vm122_vm4 = vmor %vm120_vm0, %vm121_vm1  ;;  %v1308_v0 = vpop.eup %1307 }
  0x3b   :  { %v117_v49 = vsub.f32 1.0, %v116_v42  ;;  %vm1489_vm5 = vmor %vm102_vm2, %vm103_vm3  ;;  %v158_v9 = vmul.f32 %v1308_v0, %v1308_v0 }
  0x3c   :  { %v99_v51 = vsub.f32 1.0, %v98_v43 }
  0x3d   :  { %v118_v53 = vmul.f32 %v1304_v39, %v117_v49  ;;  %v159_v18 = vmul.f32 %v158_v9, %v154_v13  ;;  %v1263_v49 = vsel %vm269_vm11, 1.0, %v1416_v44 }
  0x3e   :  { %v100_v55 = vmul.f32 %v1306_v40, %v99_v51 }
  0x3f   :  { %v119_v57 = vadd.f32 %v1304_v39, %v118_v53  ;;  %v160_v23 = vmul.f32 3.17, %v159_v18  ;;  %v65_v53 = vld [vmem:[#allocation6 + $0x5] sm:$0x1] }
  0x40   :  { %v101_v60 = vadd.f32 %v1306_v40, %v100_v55 }
  0x41   :  { %v123_v1 = vsel %vm122_vm4, %v1304_v39, %v119_v57  ;;  %v162_v33 = vsel %vm161_vm10, %v160_v23, 0.0 }
  0x42   :  { %v105_v3 = vsel %vm1489_vm5, %v1306_v40, %v101_v60  ;;  %v128_v5 = vsel %vm125_vm7, %v127_v63, %v123_v1  ;;  %v1519_v40 = vadd.f32 1.0, %v281_v30  ;;  %v163_v41 = vrot.slane %v162_v33, 4 }
  0x43   :  { %v110_v10 = vsel %vm107_vm8, %v109_v2, %v105_v3  ;;  %v129_v16 = vmul.f32 %v128_v5, %v113_v4  ;;  %v92_v2 = vmul.f32 %v66_v54, %v65_v53 }
  0x44   :  { %v111_v17 = vmul.f32 %v110_v10, %v95_v6  ;;  %v164_v59 = vadd.f32 %v163_v41, %v162_v33  ;;  %v132_v6 = vmul.f32 %v68_v58, %v68_v58 }
  0x46   :  { %v1503_v22 = vadd.f32 %v129_v16, %v111_v17  ;;  %v165_v10 = vrot.slane %v164_v59, 2 }
  0xa4   :  { %v182_v7 = vpop.xlane.xlu1 %181  ;;  %v175_v8 = vpop.xlane.xlu0 %174 }
  0xa5   :  { %v221_v11 = vmul.f32 %v182_v7, %v182_v7  ;;  %v185_v12 = vmul.f32 %v175_v8, %v175_v8 }
  0xa7   :  { %v225_v14 = vadd.f32 10000.0, %v221_v11  ;;  %v189_v15 = vadd.f32 10000.0, %v185_v12  ;;  %v223_v50 = vmul.f32 10000.0, %v221_v11  ;;  %v187_v52 = vmul.f32 10000.0, %v185_v12 }
  0xa9   :  { %1309 = vrcp.f32 %v225_v14  ;;  %v236_v36 = vand.u32 2147483647, %v225_v14  ;;  %v238_v43 = vand.u32 2147483648, %v225_v14  ;;  %v202_v45 = vand.u32 2147483648, %v189_v15 }
  0xaa   :  { %1311 = vrcp.f32 %v189_v15  ;;  %v200_v47 = vand.u32 2147483647, %v189_v15  ;;  %vm232_vm14 = vweird.f32 %v225_v14  ;;  %vm196_vm1 = vweird.f32 %v189_v15 }
  0xab   :  { %vm237_vm0 = vcmp.eq.f32.partialorder %v236_v36, 8.507059e+37  ;;  %v239_v61 = vor.u32 1.1754944e-38, %v238_v43  ;;  %v203_v62 = vor.u32 1.1754944e-38, %v202_v45  ;;  %v282_v36 = vmul.f32 %v1263_v49, %v1501_v21 }
  0xac   :  { %v184_v19 = vpop.xlane.xlu1 %183  ;;  %v177_v20 = vpop.xlane.xlu0 %176  ;;  %vm201_vm3 = vcmp.eq.f32.partialorder %v200_v47, 8.507059e+37 }
  0xad   :  { %v1505_v24 = vmul.f32 %v184_v19, %v184_v19  ;;  %v1507_v25 = vmul.f32 %v177_v20, %v177_v20  ;;  %v93_v19 = vmul.f32 %v92_v2, %v92_v2 }
  0xaf   :  { %v1310_v27 = vpop.eup %1309  ;;  %v1511_v28 = vadd.f32 10000.0, %v1505_v24  ;;  %v1514_v29 = vadd.f32 10000.0, %v1507_v25  ;;  %v224_v17 = vmul.f32 10000.0, %v1505_v24  ;;  %v188_v23 = vmul.f32 10000.0, %v1507_v25 }
  0xb0   :  { %v1312_v31 = vpop.eup %1311  ;;  %v228_v32 = vmul.f32 %v1310_v27, %v225_v14  ;;  %vm233_vm12 = vweird.f32 %v1310_v27 }
  0xb1   :  { %v192_v34 = vmul.f32 %v1312_v31, %v189_v15  ;;  %1313 = vrcp.f32 %v1511_v28  ;;  %vm197_vm13 = vweird.f32 %v1312_v31  ;;  %vm1522_vm15 = vmor %vm232_vm14, %vm233_vm12  ;;  %v251_v7 = vand.u32 2147483647, %v1511_v28 }
  0xb2   :  { %v229_v35 = vsub.f32 1.0, %v228_v32  ;;  %1315 = vrcp.f32 %v1514_v29  ;;  %vm198_vm2 = vmor %vm196_vm1, %vm197_vm13  ;;  %v253_v8 = vand.u32 2147483648, %v1511_v28  ;;  %v215_v12 = vand.u32 2147483647, %v1514_v29 }
  0xb3   :  { %v193_v39 = vsub.f32 1.0, %v192_v34  ;;  %v217_v13 = vand.u32 2147483648, %v1514_v29  ;;  %vm247_vm7 = vweird.f32 %v1511_v28  ;;  %vm211_vm9 = vweird.f32 %v1514_v29 }
  0xb4   :  { %v230_v42 = vmul.f32 %v1310_v27, %v229_v35  ;;  %v254_v20 = vor.u32 1.1754944e-38, %v253_v8  ;;  %vm252_vm10 = vcmp.eq.f32.partialorder %v251_v7, 8.507059e+37  ;;  %vm216_vm12 = vcmp.eq.f32.partialorder %v215_v12, 8.507059e+37 }
  0xb5   :  { %v194_v46 = vmul.f32 %v1312_v31, %v193_v39  ;;  %v218_v30 = vor.u32 1.1754944e-38, %v217_v13  ;;  %v133_v39 = vmul.f32 4.0, %v132_v6  ;;  %vm287_vm13 = vcmask 7168  }
  0xb6   :  { %v231_v51 = vadd.f32 %v1310_v27, %v230_v42  ;;  %vm302_vm14 = vcmask 1040384  }
  0xb7   :  { %v1314_v55 = vpop.eup %1313  ;;  %v195_v57 = vadd.f32 %v1312_v31, %v194_v46 }
  0xb8   :  { %v1316_v60 = vpop.eup %1315  ;;  %v235_v44 = vsel %vm1522_vm15, %v1310_v27, %v231_v51  ;;  %v243_v63 = vmul.f32 %v1314_v55, %v1511_v28  ;;  %vm248_vm4 = vweird.f32 %v1314_v55 }
  0xb9   :  { %v199_v0 = vsel %vm198_vm2, %v1312_v31, %v195_v57  ;;  %v207_v1 = vmul.f32 %v1316_v60, %v1514_v29  ;;  %v240_v3 = vsel %vm237_vm0, %v239_v61, %v235_v44  ;;  %vm212_vm5 = vweird.f32 %v1316_v60  ;;  %vm249_vm8 = vmor %vm247_vm7, %vm248_vm4 }
  0xba   :  { %v204_v4 = vsel %vm201_vm3, %v203_v62, %v199_v0  ;;  %v244_v5 = vsub.f32 1.0, %v243_v63  ;;  %v241_v14 = vmul.f32 %v240_v3, %v223_v50  ;;  %vm213_vm11 = vmor %vm211_vm9, %vm212_vm5  ;;  %v166_v31 = vadd.f32 %v165_v10, %v164_v59 }
  0xbb   :  { %v208_v9 = vsub.f32 1.0, %v207_v1  ;;  %v205_v15 = vmul.f32 %v204_v4, %v187_v52  ;;  %v131_v29 = vmul.f32 %v1503_v22, %v93_v19 }
  0xbc   :  { %v245_v11 = vmul.f32 %v1314_v55, %v244_v5  ;;  %v167_v42 = vrot.slane %v166_v31, 1 }
  0xbd   :  { %v209_v16 = vmul.f32 %v1316_v60, %v208_v9  ;;  %v257_v24 = vadd.f32 %v241_v14, %v205_v15  ;;  %v300_v50 = vadd.f32 %v133_v39, %v131_v29 }
  0xbe   :  { %v246_v18 = vadd.f32 %v1314_v55, %v245_v11  ;;  %v168_v47 = vadd.f32 %v167_v42, %v166_v31 }
  0xbf   :  { %v210_v26 = vadd.f32 %v1316_v60, %v209_v16  ;;  %v285_v25 = vmul.f32 %v1519_v40, %v257_v24 }
  0xc0   :  { %v250_v27 = vsel %vm249_vm8, %v1314_v55, %v246_v18  ;;  %v301_v52 = vadd.f32 %v300_v50, %v168_v47 }
  0xc1   :  { %v255_v32 = vsel %vm252_vm10, %v254_v20, %v250_v27  ;;  %v214_v33 = vsel %vm213_vm11, %v1316_v60, %v210_v26  ;;  %v288_v45 = vsel %vm287_vm13, %v285_v25, 0.0 }
  0xc2   :  { %v256_v34 = vmul.f32 %v255_v32, %v224_v17  ;;  %v219_v35 = vsel %vm216_vm12, %v218_v30, %v214_v33  ;;  %v303_v53 = vsel %vm302_vm14, %v301_v52, 0.0 }
  0xc3   :  { %v220_v28 = vmul.f32 %v219_v35, %v188_v23 }
  0xc5   :  { %v258_v41 = vadd.f32 %v256_v34, %v220_v28 }
  0xc7   :  { %v286_v43 = vmul.f32 %v282_v36, %v258_v41 }
  0xc9   :  { %v289_v46 = vsel %vm287_vm13, %v286_v43, 0.0 }
  0xca   :  { %v290_v51 = vadd.f32 %v289_v46, %v288_v45 }
  0xcc   :  { %291 = vadd.xlane.f32.xlu2 %v290_v51 }
  0xd4   :  { %304 = vadd.xlane.f32.xlu2 %v303_v53 }
 0x13f   :  { %v292_v21 = vpop.xlane.xlu2 %291 }
 0x140   :  { %v293_v49 = vrot.slane %v292_v21, 4 }
 0x142   :  { %v294_v40 = vadd.f32 %v293_v49, %v292_v21 }
 0x144   :  { %v295_v54 = vrot.slane %v294_v40, 2 }
 0x146   :  { %v296_v22 = vadd.f32 %v295_v54, %v294_v40 }
 0x147   :  { %v305_v55 = vpop.xlane.xlu2 %304 }
 0x148   :  { %v306_v56 = vrot.slane %v305_v55, 4  ;;  %v297_v57 = vrot.slane %v296_v22, 1 }
 0x14a   :  { %v307_v58 = vadd.f32 %v306_v56, %v305_v55  ;;  %v298_v59 = vadd.f32 %v297_v57, %v296_v22 }
 0x14c   :  { %v308_v60 = vrot.slane %v307_v58, 2  ;;  %1279 = vpush %v298_v59 }
 0x14e   :  { %v309_v44 = vadd.f32 %v308_v60, %v307_v58 }
 0x150   :  { %v310_v61 = vrot.slane %v309_v44, 1 }
 0x152   :  { %v311_v62 = vadd.f32 %v310_v61, %v309_v44 }
 0x154   :  { %1281 = vpush %v311_v62 }
 0x17d   :  { %s1280_s29 = spop %1279 }
 0x184   :  { %320 = sbr.rel (%p1265_p1) target bundleno = 777 (0x309), region = 29 }
 0x185   :  { %s1282_s30 = spop %1281 }
 0x186   :  { %s313_s4 = sadd.f32 %s1282_s30, %s1280_s29 }
 0x188   :  { %315 = sst [smem:[#allocation9]] %s313_s4 }
 0x189   :  { %vm321_vm15 = vcmp.ge.s32.totalorder %v1458_v38, 15  ;;  %vm322_vm0 = vcmp.le.s32.totalorder %v1458_v38, 20  ;;  %vm326_vm1 = vcmp.eq.s32.totalorder %v1458_v38, 21  ;;  %v331_v63 = vmul.f32 %v1484_v48, %v1484_v48  ;;  %s1231_s5 = sld [smem:[#allocation9]] }
 0x18a   :  { %vm323_vm2 = vmand %vm321_vm15, %vm322_vm0  ;;  %v1417_v0 = vmov 0.0   ;;  %v1418_v22 = vmov 683565275   ;;  %v1419_v56 = vmov 2475754826  }
 0x18b   :  { %v1266_v1 = vsel %vm323_vm2, 1.0, %v1417_v0  ;;  %vm327_vm3 = vmand %vm143_vm6, %vm326_vm1  ;;  %v333_v4 = vrot.slane %v331_v63, 1  ;;  %v336_v5 = vrot.slane %v331_v63, 2  ;;  %v1420_v58 = vmov 2131351028  }
 0x18c   :  { %v328_v2 = vsel %vm327_vm3, 3.1415927, %v1417_v0  ;;  %v329_v3 = vmul.f32 %v1266_v1, %v1484_v48  ;;  %v1421_v60 = vmov 2102212464   ;;  %v1422_v61 = vmov 920167782  }
 0x18d   :  { %v335_v7 = vadd.f32 %v333_v4, %v331_v63 }
 0x18e   :  { %v1555_v6 = vadd.f32 %v329_v3, %v328_v2 }
 0x18f   :  { %v1557_v8 = vadd.f32 %v336_v5, %v335_v7 }
 0x190   :  { %v774_v9 = vmul.f32 %v1555_v6, %v1555_v6 }
 0x191   :  { %1317 = vrsqrt.f32 %v1557_v8  ;;  %vm346_vm6 = vcmp.eq.f32.partialorder %v1557_v8, inf  ;;  %v349_v23 = vand.u32 2147483648, %v1557_v8  ;;  %vm348_vm4 = vcmp.eq.f32.partialorder %v1557_v8, 0.0 }
 0x192   :  { %v776_v10 = vrot.slane %v774_v9, 1  ;;  %v779_v11 = vrot.slane %v774_v9, 2 }
 0x194   :  { %v778_v37 = vadd.f32 %v776_v10, %v774_v9  ;;  %v1423_v9 = vmov 1326507024  }
 0x196   :  { %v1562_v12 = vadd.f32 %v779_v11, %v778_v37 }
 0x197   :  { %v1318_v13 = vpop.eup %1317 }
 0x198   :  { %v340_v14 = vmul.f32 %v1318_v13, %v1557_v8  ;;  %1319 = vrsqrt.f32 %v1562_v12  ;;  %vm789_vm5 = vcmp.eq.f32.partialorder %v1562_v12, inf  ;;  %v792_v36 = vand.u32 2147483648, %v1562_v12 }
 0x199   :  { %vm791_vm7 = vcmp.eq.f32.partialorder %v1562_v12, 0.0 }
 0x19a   :  { %v341_v15 = vmul.f32 %v1318_v13, %v340_v14 }
 0x19c   :  { %v342_v16 = vmul.f32 0.5, %v341_v15 }
 0x19e   :  { %v343_v17 = vsub.f32 1.5, %v342_v16  ;;  %v1320_v18 = vpop.eup %1319 }
 0x19f   :  { %v783_v20 = vmul.f32 %v1320_v18, %v1562_v12 }
 0x1a0   :  { %v344_v19 = vmul.f32 %v1318_v13, %v343_v17 }
 0x1a1   :  { %v784_v27 = vmul.f32 %v1320_v18, %v783_v20 }
 0x1a2   :  { %v345_v26 = vmul.f32 %v344_v19, %v1557_v8 }
 0x1a3   :  { %v785_v31 = vmul.f32 0.5, %v784_v27 }
 0x1a4   :  { %v347_v30 = vsel %vm346_vm6, %v1557_v8, %v345_v26 }
 0x1a5   :  { %v1572_v32 = vsel %vm348_vm4, %v349_v23, %v347_v30  ;;  %v786_v24 = vsub.f32 1.5, %v785_v31 }
 0x1a6   :  { %v1575_v33 = vmul.f32 0.5, %v1572_v32 }
 0x1a7   :  { %v787_v28 = vmul.f32 %v1320_v18, %v786_v24 }
 0x1a8   :  { %v363_v34 = vand.u32 2147483647, %v1575_v33  ;;  %v366_v35 = vand.u32 2139095040, %v1575_v33 }
 0x1a9   :  { %v788_v25 = vmul.f32 %v787_v28, %v1562_v12 }
 0x1aa   :  { %v367_v39 = vshrl.u32 %v366_v35, 23  ;;  %v370_v41 = vand.u32 8388607, %v363_v34 }
 0x1ab   :  { %v790_v42 = vsel %vm789_vm5, %v1562_v12, %v788_v25 }
 0x1ac   :  { %v1267_v29 = vadd.s32 4294967169, %v367_v39  ;;  %v371_v43 = vor.u32 8388608, %v370_v41  ;;  %v1586_v45 = vsel %vm791_vm7, %v792_v36, %v790_v42 }
 0x1ad   :  { %v1589_v47 = vmul.f32 0.5, %v1586_v45 }
 0x1ae   :  { %v373_v46 = vadd.s32 1, %v1267_v29  ;;  %v1591_v51 = vshll.u32 %v371_v43, 8 }
 0x1af   :  { %v799_v52 = vand.u32 2147483647, %v1589_v47  ;;  %v802_v53 = vand.u32 2139095040, %v1589_v47 }
 0x1b0   :  { %vm374_vm8 = vcmp.gt.s32.totalorder %v373_v46, 0  ;;  %v412_v63 = vand.u32 65535, %v1591_v51  ;;  %v413_v17 = vshrl.u32 %v1591_v51, 16 }
 0x1b1   :  { %v375_v50 = vsel %vm374_vm8, %v373_v46, 0  ;;  %v803_v40 = vshrl.u32 %v802_v53, 23  ;;  %v806_v1 = vand.u32 8388607, %v799_v52 }
 0x1b2   :  { %v376_v21 = vshrl.u32 %v375_v50, 5  ;;  %v377_v49 = vand.u32 31, %v375_v50 }
 0x1b3   :  { %v1273_v14 = vadd.s32 4294967169, %v803_v40  ;;  %v807_v27 = vor.u32 8388608, %v806_v1 }
 0x1b4   :  { %v378_v54 = vsub.s32 32, %v377_v49  ;;  %v380_v55 = vshll.u32 %v1418_v22, %v377_v49  ;;  %v383_v57 = vshll.u32 %v1419_v56, %v377_v49  ;;  %v386_v59 = vshll.u32 %v1420_v58, %v377_v49 }
 0x1b5   :  { %v389_v44 = vshll.u32 %v1421_v60, %v377_v49  ;;  %v392_v62 = vshll.u32 %v1422_v61, %v377_v49  ;;  %vm395_vm9 = vcmp.lt.s32.totalorder %v376_v21, 1  ;;  %vm398_vm10 = vcmp.lt.s32.totalorder %v376_v21, 4 }
 0x1b6   :  { %v381_v2 = vshrl.u32 %v1419_v56, %v378_v54  ;;  %v384_v3 = vshrl.u32 %v1420_v58, %v378_v54  ;;  %v387_v4 = vshrl.u32 %v1421_v60, %v378_v54  ;;  %v379_v5 = vshrl.u32 %v1418_v22, %v378_v54 }
 0x1b7   :  { %v390_v7 = vshrl.u32 %v1422_v61, %v378_v54  ;;  %v393_v10 = vshrl.u32 %v1423_v9, %v378_v54  ;;  %vm397_vm11 = vcmp.lt.s32.totalorder %v376_v21, 3  ;;  %vm396_vm12 = vcmp.lt.s32.totalorder %v376_v21, 2 }
 0x1b8   :  { %v382_v11 = vor.u32 %v381_v2, %v380_v55  ;;  %v385_v37 = vor.u32 %v384_v3, %v383_v57  ;;  %v388_v13 = vor.u32 %v387_v4, %v386_v59  ;;  %v809_v30 = vadd.s32 1, %v1273_v14 }
 0x1b9   :  { %v391_v15 = vor.u32 %v390_v7, %v389_v44  ;;  %v394_v16 = vor.u32 %v393_v10, %v392_v62  ;;  %v1618_v49 = vshll.u32 %v807_v27, 8 }
 0x1ba   :  { %v400_v18 = vsel %vm398_vm10, %v388_v13, 2102212464  ;;  %v403_v19 = vsel %vm395_vm9, %v382_v11, %v385_v37  ;;  %v407_v20 = vsel %vm395_vm9, %v385_v37, %v388_v13  ;;  %v399_v31 = vsel %vm395_vm9, %v379_v5, %v382_v11 }
 0x1bb   :  { %v404_v23 = vsel %vm398_vm10, %v391_v15, 920167782  ;;  %v408_v26 = vsel %vm398_vm10, %v394_v16, 1326507024  ;;  %v401_v24 = vsel %vm397_vm11, %v385_v37, %v400_v18  ;;  %vm810_vm13 = vcmp.gt.s32.totalorder %v809_v30, 0 }
 0x1bc   :  { %v405_v35 = vsel %vm397_vm11, %v388_v13, %v404_v23  ;;  %v409_v28 = vsel %vm397_vm11, %v391_v15, %v408_v26  ;;  %v1616_v43 = vsel %vm396_vm12, %v399_v31, %v401_v24  ;;  %v811_v57 = vsel %vm810_vm13, %v809_v30, 0 }
 0x1bd   :  { %v406_v36 = vsel %vm396_vm12, %v403_v19, %v405_v35  ;;  %v410_v39 = vsel %vm396_vm12, %v407_v20, %v409_v28  ;;  %v813_v10 = vand.u32 31, %v811_v57  ;;  %v1424_v11 = vmov 0  }
 0x1be   :  { %v414_v41 = vand.u32 65535, %v410_v39  ;;  %v415_v25 = vshrl.u32 %v410_v39, 16  ;;  %v436_v29 = vand.u32 65535, %v406_v36  ;;  %v437_v42 = vshrl.u32 %v406_v36, 16 }
 0x1bf   :  { %v1622_v16 = vsub.s32 32, %v813_v10  ;;  %v1625_v19 = vshrl.u32 %v811_v57, 5  ;;  %v816_v27 = vshll.u32 %v1418_v22, %v813_v10  ;;  %v819_v24 = vshll.u32 %v1419_v56, %v813_v10 }
 0x1c0   :  { %v416_v46 = vmul.u32 %v414_v41, %v412_v63  ;;  %v417_v50 = vmul.u32 %v415_v25, %v412_v63  ;;  %v418_v53 = vmul.u32 %v414_v41, %v413_v17  ;;  %v438_v40 = vmul.u32 %v436_v29, %v412_v63 }
 0x1c1   :  { %v439_v54 = vmul.u32 %v437_v42, %v412_v63  ;;  %v440_v55 = vmul.u32 %v436_v29, %v413_v17  ;;  %v419_v59 = vmul.u32 %v415_v25, %v413_v17  ;;  %v441_v1 = vmul.u32 %v437_v42, %v413_v17 }
 0x1c2   :  { %v420_v44 = vshll.u32 %v417_v50, 16  ;;  %v422_v62 = vshll.u32 %v418_v53, 16  ;;  %v421_v2 = vshrl.u32 %v417_v50, 16  ;;  %v423_v3 = vshrl.u32 %v418_v53, 16 }
 0x1c3   :  { %v442_v4 = vshll.u32 %v439_v54, 16  ;;  %v444_v5 = vshll.u32 %v440_v55, 16  ;;  %v443_v7 = vshrl.u32 %v439_v54, 16  ;;  %v445_v13 = vshrl.u32 %v440_v55, 16 }
 0x1c4   :  { %vm424_vm15 = vc.u32 %v416_v46, %v420_v44  ;;  %v426_v21 = vadd.s32 %v420_v44, %v416_v46  ;;  %v817_v31 = vshrl.u32 %v1419_v56, %v1622_v16  ;;  %v820_v35 = vshrl.u32 %v1420_v58, %v1622_v16 }
 0x1c5   :  { %v425_v37 = vsel %vm424_vm15, 1, %v1424_v11  ;;  %vm446_vm0 = vc.u32 %v438_v40, %v442_v4  ;;  %v448_v63 = vadd.s32 %v442_v4, %v438_v40  ;;  %v822_v36 = vshll.u32 %v1420_v58, %v813_v10 }
 0x1c6   :  { %v427_v14 = vadd.s32 %v425_v37, %v419_v59  ;;  %vm428_vm2 = vc.u32 %v426_v21, %v422_v62  ;;  %v447_v15 = vsel %vm446_vm0, 1, %v1424_v11  ;;  %v823_v39 = vshrl.u32 %v1421_v60, %v1622_v16 }
 0x1c7   :  { %v429_v17 = vsel %vm428_vm2, 1, %v1424_v11  ;;  %v449_v18 = vadd.s32 %v447_v15, %v441_v1  ;;  %vm450_vm3 = vc.u32 %v448_v63, %v444_v5  ;;  %v1628_v26 = vadd.s32 %v448_v63, %v444_v5 }
 0x1c8   :  { %v431_v20 = vadd.s32 %v429_v17, %v427_v14  ;;  %v451_v23 = vsel %vm450_vm3, 1, %v1424_v11  ;;  %v825_v41 = vshll.u32 %v1421_v60, %v813_v10  ;;  %v1640_v29 = vor.u32 %v817_v31, %v816_v27 }
 0x1c9   :  { %v453_v30 = vadd.s32 %v451_v23, %v449_v18  ;;  %v1642_v42 = vor.u32 %v820_v35, %v819_v24  ;;  %v826_v46 = vshrl.u32 %v1422_v61, %v1622_v16  ;;  %v824_v50 = vor.u32 %v823_v39, %v822_v36 }
 0x1ca   :  { %v432_v28 = vadd.s32 %v431_v20, %v421_v2  ;;  %v828_v53 = vshll.u32 %v1422_v61, %v813_v10  ;;  %v829_v58 = vshrl.u32 %v1423_v9, %v1622_v16  ;;  %vm831_vm6 = vcmp.lt.s32.totalorder %v1625_v19, 1 }
 0x1cb   :  { %v454_v25 = vadd.s32 %v453_v30, %v443_v7  ;;  %v827_v54 = vor.u32 %v826_v46, %v825_v41  ;;  %v456_v60 = vmul.u32 %v1591_v51, %v1616_v43  ;;  %vm833_vm5 = vcmp.lt.s32.totalorder %v1625_v19, 3 }
 0x1cc   :  { %v1646_v56 = vadd.s32 %v432_v28, %v423_v3  ;;  %v830_v55 = vor.u32 %v829_v58, %v828_v53  ;;  %vm832_vm7 = vcmp.lt.s32.totalorder %v1625_v19, 2  ;;  %vm834_vm8 = vcmp.lt.s32.totalorder %v1625_v19, 4 }
 0x1cd   :  { %v455_v40 = vadd.s32 %v454_v25, %v445_v13  ;;  %v839_v61 = vsel %vm831_vm6, %v1640_v29, %v1642_v42  ;;  %v840_v9 = vsel %vm834_vm8, %v827_v54, 920167782  ;;  %v843_v51 = vsel %vm831_vm6, %v1642_v42, %v824_v50 }
 0x1ce   :  { %vm458_vm4 = vc.u32 %v1646_v56, %v1628_v26  ;;  %v844_v43 = vsel %vm834_vm8, %v830_v55, 1326507024  ;;  %v848_v59 = vand.u32 65535, %v1618_v49  ;;  %v841_v62 = vsel %vm833_vm5, %v824_v50, %v840_v9 }
 0x1cf   :  { %v459_v57 = vadd.s32 1, %v455_v40  ;;  %v845_v1 = vsel %vm833_vm5, %v827_v54, %v844_v43  ;;  %v849_v2 = vshrl.u32 %v1618_v49, 16  ;;  %v842_v4 = vsel %vm832_vm7, %v839_v61, %v841_v62 }
 0x1d0   :  { %v846_v5 = vsel %vm832_vm7, %v843_v51, %v845_v1  ;;  %v873_v10 = vshrl.u32 %v842_v4, 16  ;;  %v872_v13 = vand.u32 65535, %v842_v4  ;;  %v815_v54 = vshrl.u32 %v1418_v22, %v1622_v16 }
 0x1d1   :  { %v460_v44 = vsel %vm458_vm4, %v459_v57, %v455_v40  ;;  %v850_v21 = vand.u32 65535, %v846_v5  ;;  %v851_v7 = vshrl.u32 %v846_v5, 16  ;;  %v836_v57 = vsel %vm834_vm8, %v824_v50, 2102212464 }
 0x1d2   :  { %v461_v3 = vadd.s32 %v460_v44, %v456_v60  ;;  %v875_v18 = vmul.u32 %v873_v10, %v848_v59  ;;  %v876_v31 = vmul.u32 %v872_v13, %v849_v2  ;;  %v874_v35 = vmul.u32 %v872_v13, %v848_v59 }
 0x1d3   :  { %v852_v63 = vmul.u32 %v850_v21, %v848_v59  ;;  %v853_v14 = vmul.u32 %v851_v7, %v848_v59  ;;  %v854_v15 = vmul.u32 %v850_v21, %v849_v2  ;;  %v855_v20 = vmul.u32 %v851_v7, %v849_v2 }
 0x1d4   :  { %v462_v37 = vadd.s32 536870912, %v461_v3  ;;  %v878_v28 = vshll.u32 %v875_v18, 16  ;;  %v877_v46 = vmul.u32 %v873_v10, %v849_v2  ;;  %v880_v40 = vshll.u32 %v876_v31, 16 }
 0x1d5   :  { %v856_v23 = vshll.u32 %v853_v14, 16  ;;  %v858_v27 = vshll.u32 %v854_v15, 16  ;;  %v857_v41 = vshrl.u32 %v853_v14, 16  ;;  %v859_v43 = vshrl.u32 %v854_v15, 16 }
 0x1d6   :  { %v1680_v17 = vshrl.u32 %v462_v37, 30  ;;  %vm882_vm12 = vc.u32 %v874_v35, %v878_v28  ;;  %v884_v9 = vadd.s32 %v878_v28, %v874_v35  ;;  %v1425_v62 = vmov 48.0  }
 0x1d7   :  { %vm860_vm9 = vc.u32 %v852_v63, %v856_v23  ;;  %v862_v24 = vadd.s32 %v856_v23, %v852_v63  ;;  %v883_v61 = vsel %vm882_vm12, 1, %v1424_v11  ;;  %1321 = vrcp.f32 %v1425_v62 }
 0x1d8   :  { %v464_v30 = vshll.u32 %v1680_v17, 30  ;;  %v861_v39 = vsel %vm860_vm9, 1, %v1424_v11  ;;  %v885_v44 = vadd.s32 %v883_v61, %v877_v46  ;;  %v879_v1 = vshrl.u32 %v875_v18, 16 }
 0x1d9   :  { %v863_v25 = vadd.s32 %v861_v39, %v855_v20  ;;  %vm864_vm10 = vc.u32 %v862_v24, %v858_v27  ;;  %vm886_vm13 = vc.u32 %v884_v9, %v880_v40  ;;  %v835_v22 = vsel %vm831_vm6, %v815_v54, %v1640_v29 }
 0x1da   :  { %v465_v36 = vsub.s32 %v461_v3, %v464_v30  ;;  %v865_v58 = vsel %vm864_vm10, 1, %v1424_v11  ;;  %v837_v16 = vsel %vm833_vm5, %v1642_v42, %v836_v57  ;;  %v887_v50 = vsel %vm886_vm13, 1, %v1424_v11 }
 0x1db   :  { %v867_v60 = vadd.s32 %v865_v58, %v863_v25  ;;  %v881_v3 = vshrl.u32 %v876_v31, 16  ;;  %v889_v4 = vadd.s32 %v887_v50, %v885_v44  ;;  %v457_v5 = vadd.s32 %v1628_v26, %v1646_v56 }
 0x1dc   :  { %vm466_vm11 = vcmp.lt.s32.totalorder %v465_v36, 0  ;;  %v467_v53 = vsub.s32 0, %v465_v36  ;;  %v888_v7 = vadd.s32 %v884_v9, %v880_v40  ;;  %v838_v37 = vsel %vm832_vm7, %v835_v22, %v837_v16 }
 0x1dd   :  { %v868_v59 = vadd.s32 %v867_v60, %v857_v41  ;;  %v890_v13 = vadd.s32 %v889_v4, %v879_v1  ;;  %vm352_vm0 = vcmp.lt.f32.partialorder %v1572_v32, 1e-06  ;;  %v1322_v14 = vpop.eup %1321  ;;  %v892_v20 = vmul.u32 %v1618_v49, %v838_v37 }
 0x1de   :  { %v468_v55 = vsel %vm466_vm11, %v467_v53, %v465_v36  ;;  %v1706_v26 = vsel %vm352_vm0, 1.0, %v1572_v32  ;;  %v355_v27 = vmul.f32 48.0, %v1322_v14  ;;  %v487_v49 = vsub.s32 4, %v1680_v17 }
 0x1df   :  { %v469_v51 = vclz %v468_v55  ;;  %v869_v21 = vadd.s32 %v868_v59, %v859_v43  ;;  %v891_v11 = vadd.s32 %v890_v13, %v881_v3  ;;  %1323 = vrcp.f32 %v1706_v26 }
 0x1e0   :  { %v356_v39 = vsub.f32 1.0, %v355_v27  ;;  %vm365_vm3 = vcmp.lt.s32.totalorder %v1575_v33, 0  ;;  %vm364_vm6 = vcmp.le.f32.partialorder %v363_v34, 0.7853982  ;;  %vm359_vm5 = vweird.f32 %v1322_v14 }
 0x1e1   :  { %v1268_v2 = vadd.s32 4294967294, %v469_v51  ;;  %vm894_vm2 = vc.u32 %v869_v21, %v888_v7  ;;  %v895_v19 = vadd.s32 1, %v891_v11  ;;  %v488_v40 = vsel %vm365_vm3, %v487_v49, %v1680_v17 }
 0x1e2   :  { %v357_v54 = vmul.f32 %v1322_v14, %v356_v39  ;;  %v490_v9 = vsel %vm364_vm6, 0, %v488_v40  ;;  %v893_v13 = vadd.s32 %v888_v7, %v869_v21  ;;  %vm523_vm8 = vweird.f32 %v1706_v26 }
 0x1e3   :  { %vm1269_vm15 = vcmp.lt.s32.totalorder %v1268_v2, 0  ;;  %v896_v30 = vsel %vm894_vm2, %v895_v19, %v891_v11  ;;  %v507_v1 = vadd.s32 3, %v490_v9  ;;  %v527_v7 = vand.u32 2147483647, %v1706_v26 }
 0x1e4   :  { %v472_v10 = vsel %vm1269_vm15, 0, %v1268_v2  ;;  %v897_v35 = vadd.s32 %v896_v30, %v892_v20  ;;  %v358_v59 = vadd.f32 %v1322_v14, %v357_v54  ;;  %vm795_vm11 = vcmp.lt.f32.partialorder %v1586_v45, 1e-06 }
 0x1e5   :  { %v473_v29 = vsub.s32 32, %v472_v10  ;;  %v474_v63 = vshll.u32 %v465_v36, %v472_v10  ;;  %v477_v42 = vsub.s32 4294967266, %v472_v10  ;;  %v1713_v46 = vpop.eup %1323  ;;  %v508_v10 = vand.u32 3, %v507_v1 }
 0x1e6   :  { %v898_v36 = vadd.s32 536870912, %v897_v35  ;;  %v519_v61 = vmul.f32 %v1713_v46, %v1706_v26  ;;  %v1722_v3 = vsel %vm359_vm5, %v1322_v14, %v358_v59  ;;  %vm524_vm9 = vweird.f32 %v1713_v46 }
 0x1e7   :  { %v475_v15 = vshrl.u32 %v457_v5, %v473_v29  ;;  %v478_v18 = vadd.s32 127, %v477_v42  ;;  %v361_v14 = vmul.f32 %v1722_v3, %v1557_v8  ;;  %vm1734_vm10 = vmor %vm523_vm8, %vm524_vm9  ;;  %vm509_vm12 = vcmp.lt.s32.totalorder %v508_v10, 2 }
 0x1e8   :  { %v1710_v25 = vshrl.u32 %v898_v36, 30  ;;  %v520_v2 = vsub.f32 1.0, %v519_v61  ;;  %vm513_vm13 = vcmp.eq.s32.totalorder %v508_v10, 2  ;;  %vm510_vm15 = vcmp.eq.s32.totalorder %v508_v10, 0 }
 0x1e9   :  { %v476_v56 = vor.u32 %v475_v15, %v474_v63  ;;  %v479_v23 = vshll.u32 %v478_v18, 23  ;;  %vm528_vm2 = vcmp.eq.f32.partialorder %v527_v7, 8.507059e+37  ;;  %v1746_v54 = vsel %vm795_vm11, 1.0, %v1586_v45 }
 0x1ea   :  { %v900_v58 = vshll.u32 %v1710_v25, 30  ;;  %v521_v37 = vmul.f32 %v1713_v46, %v520_v2  ;;  %1325 = vrcp.f32 %v1746_v54  ;;  %vm1755_vm8 = vcmp.le.f32.partialorder %v799_v52, 0.7853982 }
 0x1eb   :  { %v480_v31 = vor.u32 4788187, %v479_v23  ;;  %v483_v24 = vcvt.s32.f32 %v476_v56  ;;  %v529_v56 = vand.u32 2147483648, %v1706_v26  ;;  %v923_v52 = vsub.s32 4, %v1710_v25 }
 0x1ec   :  { %v901_v55 = vsub.s32 %v897_v35, %v900_v58  ;;  %v522_v21 = vadd.f32 %v1713_v46, %v521_v37  ;;  %v678_v35 = vand.u32 3, %v490_v9 }
 0x1ed   :  { %v481_v28 = vand.u32 2147483647, %v480_v31  ;;  %v530_v39 = vor.u32 1.1754944e-38, %v529_v56 }
 0x1ee   :  { %vm902_vm4 = vcmp.lt.s32.totalorder %v901_v55, 0  ;;  %v903_v43 = vsub.s32 0, %v901_v55  ;;  %vm679_vm5 = vcmp.lt.s32.totalorder %v678_v35, 2 }
 0x1ef   :  { %v484_v41 = vmul.f32 %v483_v24, %v481_v28 }
 0x1f0   :  { %v904_v62 = vsel %vm902_vm4, %v903_v43, %v901_v55  ;;  %vm506_vm4 = vweird.f32 %v1575_v33 }
 0x1f1   :  { %v485_v53 = vxor.u32 2147483648, %v484_v41  ;;  %v905_v17 = vclz %v904_v62 }
 0x1f3   :  { %v486_v60 = vsel %vm365_vm3, %v485_v53, %v484_v41  ;;  %v1274_v50 = vadd.s32 4294967294, %v905_v17  ;;  %v526_v41 = vsel %vm1734_vm10, %v1713_v46, %v522_v21  ;;  %vm680_vm3 = vcmp.eq.s32.totalorder %v678_v35, 0 }
 0x1f4   :  { %v489_v57 = vsel %vm364_vm6, %v1575_v33, %v486_v60  ;;  %vm683_vm6 = vcmp.eq.s32.totalorder %v678_v35, 2  ;;  %v531_v61 = vsel %vm528_vm2, %v530_v39, %v526_v41 }
 0x1f5   :  { %v491_v51 = vmul.f32 %v489_v57, %v489_v57  ;;  %vm1275_vm7 = vcmp.lt.s32.totalorder %v1274_v50, 0 }
 0x1f6   :  { %v908_v42 = vsel %vm1275_vm7, 0, %v1274_v50  ;;  %vm801_vm7 = vcmp.lt.s32.totalorder %v1589_v47, 0 }
 0x1f7   :  { %v492_v44 = vmul.f32 -0.001358992, %v491_v51  ;;  %v499_v34 = vmul.f32 -0.00019511016, %v491_v51  ;;  %v909_v11 = vsub.s32 32, %v908_v42  ;;  %v910_v15 = vshll.u32 %v901_v55, %v908_v42 }
 0x1f8   :  { %v913_v18 = vsub.s32 4294967266, %v908_v42  ;;  %v362_v55 = vsub.f32 0.5, %v361_v14  ;;  %v924_v33 = vsel %vm801_vm7, %v923_v52, %v1710_v25 }
 0x1f9   :  { %v493_v22 = vadd.f32 0.041655596, %v492_v44  ;;  %v500_v16 = vadd.f32 0.008332121, %v499_v34  ;;  %v911_v23 = vshrl.u32 %v893_v13, %v909_v11  ;;  %v926_v14 = vsel %vm1755_vm8, 0, %v924_v33 }
 0x1fa   :  { %v914_v27 = vadd.s32 127, %v913_v18 }
 0x1fb   :  { %v494_v4 = vmul.f32 %v493_v22, %v491_v51  ;;  %v501_v5 = vmul.f32 %v500_v16, %v491_v51  ;;  %v912_v8 = vor.u32 %v911_v23, %v910_v15  ;;  %v943_v23 = vadd.s32 3, %v926_v14 }
 0x1fc   :  { %v915_v28 = vshll.u32 %v914_v27, 23 }
 0x1fd   :  { %v495_v29 = vadd.f32 -0.4999988, %v494_v4  ;;  %v502_v63 = vadd.f32 -0.16666654, %v501_v5  ;;  %v919_v53 = vcvt.s32.f32 %v912_v8  ;;  %v1326_v4 = vpop.eup %1325 }
 0x1fe   :  { %v916_v26 = vor.u32 4788187, %v915_v28  ;;  %vm960_vm9 = vweird.f32 %v1326_v4 }
 0x1ff   :  { %v496_v20 = vmul.f32 %v495_v29, %v491_v51  ;;  %v503_v19 = vmul.f32 %v502_v63, %v491_v51  ;;  %v955_v63 = vmul.f32 %v1326_v4, %v1746_v54 }
 0x200   :  { %v917_v60 = vand.u32 2147483647, %v916_v26  ;;  %v965_v26 = vand.u32 2147483648, %v1746_v54 }
 0x201   :  { %v497_v30 = vadd.f32 1.0, %v496_v20  ;;  %v504_v31 = vadd.f32 1.0, %v503_v19  ;;  %v956_v25 = vsub.f32 1.0, %v955_v63 }
 0x202   :  { %v920_v43 = vmul.f32 %v919_v53, %v917_v60 }
 0x203   :  { %v505_v36 = vmul.f32 %v504_v31, %v489_v57  ;;  %v514_v49 = vxor.u32 2147483648, %v497_v30  ;;  %v957_v35 = vmul.f32 %v1326_v4, %v956_v25 }
 0x204   :  { %v921_v62 = vxor.u32 2147483648, %v920_v43 }
 0x205   :  { %v511_v58 = vxor.u32 2147483648, %v505_v36  ;;  %v515_v40 = vsel %vm513_vm13, %v514_v49, %v505_v36  ;;  %v685_v51 = vsel %vm683_vm6, %v514_v49, %v505_v36  ;;  %v944_v36 = vand.u32 3, %v943_v23 }
 0x206   :  { %v922_v17 = vsel %vm801_vm7, %v921_v62, %v920_v43  ;;  %v1114_v49 = vand.u32 3, %v926_v14 }
 0x207   :  { %v512_v57 = vsel %vm510_vm15, %v497_v30, %v511_v58  ;;  %v682_v9 = vsel %vm680_vm3, %v497_v30, %v511_v58  ;;  %v925_v16 = vsel %vm1755_vm8, %v1589_v47, %v922_v17  ;;  %v958_v58 = vadd.f32 %v1326_v4, %v957_v35 }
 0x208   :  { %v516_v46 = vsel %vm509_vm12, %v512_v57, %v515_v40  ;;  %v686_v1 = vsel %vm679_vm5, %v682_v9, %v685_v51  ;;  %v927_v37 = vmul.f32 %v925_v16, %v925_v16  ;;  %v963_v40 = vand.u32 2147483647, %v1746_v54 }
 0x209   :  { %v517_v59 = vsel %vm506_vm4, nan, %v516_v46  ;;  %v1768_v50 = vsel %vm506_vm4, nan, %v686_v1  ;;  %vm949_vm12 = vcmp.eq.s32.totalorder %v944_v36, 2  ;;  %vm1119_vm13 = vcmp.eq.s32.totalorder %v1114_v49, 2 }
 0x20a   :  { %v532_v44 = vmul.f32 %v531_v61, %v517_v59  ;;  %v696_v13 = vmul.f32 %v1768_v50, %v1768_v50  ;;  %v928_v29 = vmul.f32 -0.001358992, %v927_v37  ;;  %v935_v18 = vmul.f32 -0.00019511016, %v927_v37 }
 0x20b   :  { %v797_v61 = vmul.f32 %v1562_v12, %v1722_v3  ;;  %vm945_vm15 = vcmp.lt.s32.totalorder %v944_v36, 2  ;;  %vm946_vm2 = vcmp.eq.s32.totalorder %v944_v36, 0  ;;  %v966_v9 = vor.u32 1.1754944e-38, %v965_v26 }
 0x20c   :  { %v533_v2 = vsel %vm352_vm0, %v362_v55, %v532_v44  ;;  %v929_v20 = vadd.f32 0.041655596, %v928_v29  ;;  %v936_v21 = vadd.f32 0.008332121, %v935_v18  ;;  %vm959_vm0 = vweird.f32 %v1746_v54 }
 0x20d   :  { %v690_v22 = vrot.slane %v533_v2, 7  ;;  %v1772_v5 = vmul.f32 %v533_v2, %v1484_v48  ;;  %v693_v10 = vrot.slane %v533_v2, 6  ;;  %vm1810_vm10 = vmor %vm959_vm0, %vm960_vm9  ;;  %vm964_vm3 = vcmp.eq.f32.partialorder %v963_v40, 8.507059e+37 }
 0x20e   :  { %v930_v7 = vmul.f32 %v929_v20, %v927_v37  ;;  %v937_v30 = vmul.f32 %v936_v21, %v927_v37  ;;  %v962_v54 = vsel %vm1810_vm10, %v1326_v4, %v958_v58  ;;  %vm1116_vm6 = vcmp.eq.s32.totalorder %v1114_v49, 0 }
 0x20f   :  { %v1775_v32 = vmul.f32 %v690_v22, %v1484_v48  ;;  %v1784_v42 = vmul.f32 %v693_v10, %v1484_v48  ;;  %v1788_v11 = vmul.f32 %v1772_v5, %v1772_v5  ;;  %vm1115_vm4 = vcmp.lt.s32.totalorder %v1114_v49, 2 }
 0x210   :  { %v931_v27 = vadd.f32 -0.4999988, %v930_v7  ;;  %v938_v28 = vadd.f32 -0.16666654, %v937_v30  ;;  %vm942_vm5 = vweird.f32 %v1589_v47  ;;  %v967_v3 = vsel %vm964_vm3, %v966_v9, %v962_v54 }
 0x211   :  { %v1792_v15 = vmul.f32 %v1775_v32, %v1775_v32  ;;  %v698_v19 = vadd.f32 %v1788_v11, %v696_v13  ;;  %v1800_v48 = vmul.f32 %v1784_v42, %v1784_v42  ;;  %v798_v34 = vsub.f32 0.5, %v797_v61 }
 0x212   :  { %v932_v8 = vmul.f32 %v931_v27, %v927_v37  ;;  %v939_v41 = vmul.f32 %v938_v28, %v927_v37  ;;  %v737_v7 = vrot.slane %v1768_v50, 6  ;;  %v749_v23 = vrot.slane %v1768_v50, 7 }
 0x213   :  { %v701_v56 = vrot.slane %v1792_v15, 1  ;;  %v706_v24 = vrot.slane %v1800_v48, 2  ;;  %v733_v28 = vrot.slane %v1775_v32, 1  ;;  %v746_v49 = vrot.slane %v1784_v42, 2 }
 0x214   :  { %v933_v39 = vadd.f32 1.0, %v932_v8  ;;  %v940_v60 = vadd.f32 1.0, %v939_v41  ;;  %v724_v8 = vrot.slane %v1800_v48, 1  ;;  %v739_v36 = vmul.f32 %v737_v7, %v1784_v42 }
 0x215   :  { %v703_v31 = vadd.f32 %v701_v56, %v698_v19  ;;  %v762_v41 = vrot.slane %v1784_v42, 1  ;;  %v735_v57 = vmul.f32 %v733_v28, %v1772_v5  ;;  %v748_v42 = vmul.f32 %v746_v49, %v1772_v5 }
 0x216   :  { %v950_v55 = vxor.u32 2147483648, %v933_v39  ;;  %v941_v46 = vmul.f32 %v940_v60, %v925_v16  ;;  %v741_v9 = vrot.slane %v739_v36, 2 }
 0x217   :  { %v1807_v53 = vadd.f32 %v706_v24, %v703_v31 }
 0x218   :  { %v947_v51 = vxor.u32 2147483648, %v941_v46  ;;  %v951_v43 = vsel %vm949_vm12, %v950_v55, %v941_v46  ;;  %v1121_v59 = vsel %vm1119_vm13, %v950_v55, %v941_v46  ;;  %v726_v55 = vadd.f32 %v724_v8, %v1792_v15 }
 0x219   :  { %1327 = vrcp.f32 %v1807_v53  ;;  %v720_v27 = vand.u32 2147483648, %v1807_v53  ;;  %v718_v31 = vand.u32 2147483647, %v1807_v53 }
 0x21a   :  { %v948_v12 = vsel %vm946_vm2, %v933_v39, %v947_v51  ;;  %v1118_v44 = vsel %vm1116_vm6, %v933_v39, %v947_v51  ;;  %v751_v39 = vmul.f32 %v749_v23, %v1775_v32  ;;  %v764_v51 = vmul.f32 %v762_v41, %v1775_v32 }
 0x21b   :  { %v952_v62 = vsel %vm945_vm15, %v948_v12, %v951_v43  ;;  %v1122_v1 = vsel %vm1115_vm4, %v1118_v44, %v1121_v59  ;;  %v721_v26 = vor.u32 1.1754944e-38, %v720_v27  ;;  %vm719_vm0 = vcmp.eq.f32.partialorder %v718_v31, 8.507059e+37 }
 0x21c   :  { %v953_v2 = vsel %vm942_vm5, nan, %v952_v62  ;;  %v1123_v16 = vsel %vm942_vm5, nan, %v1122_v1  ;;  %v753_v54 = vrot.slane %v751_v39, 1  ;;  %v728_v1 = vrot.slane %v726_v55, 1 }
 0x21d   :  { %v968_v22 = vmul.f32 %v967_v3, %v953_v2  ;;  %v1132_v37 = vmul.f32 %v1123_v16, %v1123_v16  ;;  %v1173_v58 = vrot.slane %v1123_v16, 6  ;;  %v1185_v60 = vrot.slane %v1123_v16, 7 }
 0x21e   :  { %v755_v7 = vadd.f32 %v753_v54, %v748_v42  ;;  %v757_v23 = vadd.f32 %v741_v9, %v735_v57  ;;  %vm1228_vm15 = vcmp.lt.s32.totalorder %v1458_v38, 21 }
 0x21f   :  { %v1328_v17 = vpop.eup %1327  ;;  %v969_v52 = vsel %vm795_vm11, %v798_v34, %v968_v22  ;;  %vm714_vm11 = vweird.f32 %v1807_v53 }
 0x220   :  { %v710_v4 = vmul.f32 %v1328_v17, %v1807_v53  ;;  %v1825_v10 = vmul.f32 %v969_v52, %v1555_v6  ;;  %v1126_v47 = vrot.slane %v969_v52, 7  ;;  %v1129_v13 = vrot.slane %v969_v52, 6 }
 0x221   :  { %vm715_vm7 = vweird.f32 %v1328_v17  ;;  %v765_v53 = vmul.f32 %v1772_v5, %v1768_v50 }
 0x222   :  { %v1128_v33 = vmul.f32 %v1126_v47, %v1555_v6  ;;  %v1830_v29 = vmul.f32 %v1825_v10, %v1825_v10  ;;  %v711_v63 = vsub.f32 1.0, %v710_v4  ;;  %v1131_v18 = vmul.f32 %v1129_v13, %v1555_v6  ;;  %vm1844_vm8 = vmor %vm714_vm11, %vm715_vm7 }
 0x223   :  { %v1201_v46 = vmul.f32 %v1825_v10, %v1123_v16  ;;  %v767_v59 = vrot.slane %v765_v53, 7 }
 0x224   :  { %v1134_v45 = vadd.f32 %v1830_v29, %v1132_v37  ;;  %v1135_v14 = vmul.f32 %v1128_v33, %v1128_v33  ;;  %v1834_v20 = vmul.f32 %v1131_v18, %v1131_v18  ;;  %v712_v19 = vmul.f32 %v1328_v17, %v711_v63 }
 0x225   :  { %v1198_v61 = vrot.slane %v1131_v18, 1  ;;  %v1169_v12 = vrot.slane %v1128_v33, 1  ;;  %v1175_v3 = vmul.f32 %v1173_v58, %v1131_v18  ;;  %v1182_v15 = vrot.slane %v1131_v18, 2 }
 0x226   :  { %v1137_v25 = vrot.slane %v1135_v14, 1  ;;  %v1142_v56 = vrot.slane %v1834_v20, 2  ;;  %v713_v30 = vadd.f32 %v1328_v17, %v712_v19  ;;  %v1160_v34 = vrot.slane %v1834_v20, 1 }
 0x227   :  { %v1187_v62 = vmul.f32 %v1185_v60, %v1128_v33  ;;  %v1203_v22 = vrot.slane %v1201_v46, 7  ;;  %v769_v32 = vsub.f32 %v764_v51, %v767_v59  ;;  %v1171_v4 = vmul.f32 %v1169_v12, %v1825_v10 }
 0x228   :  { %v1139_v21 = vadd.f32 %v1137_v25, %v1134_v45  ;;  %v717_v40 = vsel %vm1844_vm8, %v1328_v17, %v713_v30  ;;  %v1200_v17 = vmul.f32 %v1198_v61, %v1128_v33  ;;  %v1177_v47 = vrot.slane %v1175_v3, 2 }
 0x229   :  { %v722_v43 = vsel %vm719_vm0, %v721_v26, %v717_v40  ;;  %v1162_v13 = vadd.f32 %v1160_v34, %v1135_v14  ;;  %v1184_v63 = vmul.f32 %v1182_v15, %v1825_v10  ;;  %v1189_v45 = vrot.slane %v1187_v62, 1 }
 0x22a   :  { %v1144_v6 = vadd.f32 %v1142_v56, %v1139_v21  ;;  %v723_v52 = vmul.f32 2.0, %v722_v43  ;;  %v743_v18 = vsub.f32 %v735_v57, %v741_v9  ;;  %v759_v33 = vadd.f32 %v706_v24, %v1788_v11 }
 0x22b   :  { %v1205_v21 = vsub.f32 %v1200_v17, %v1203_v22  ;;  %v771_v14 = vrot.slane %v769_v32, 1  ;;  %v1179_v30 = vsub.f32 %v1171_v4, %v1177_v47  ;;  %v1164_v31 = vrot.slane %v1162_v13, 1 }
 0x22c   :  { %1329 = vrcp.f32 %v1144_v6  ;;  %v1156_v2 = vand.u32 2147483648, %v1144_v6  ;;  %vm1150_vm9 = vweird.f32 %v1144_v6  ;;  %v1154_v5 = vand.u32 2147483647, %v1144_v6 }
 0x22d   :  { %v1191_v35 = vadd.f32 %v1189_v45, %v1184_v63  ;;  %v1193_v48 = vadd.f32 %v1177_v47, %v1171_v4  ;;  %v760_v11 = vmul.f32 %v759_v33, %v723_v52  ;;  %v1195_v8 = vadd.f32 %v1142_v56, %v1830_v29 }
 0x22e   :  { %v1157_v19 = vor.u32 1.1754944e-38, %v1156_v2  ;;  %vm1155_vm13 = vcmp.eq.f32.partialorder %v1154_v5, 8.507059e+37  ;;  %v1207_v28 = vrot.slane %v1205_v21, 1  ;;  %v744_v36 = vmul.f32 %v743_v18, %v723_v52 }
 0x22f   :  { %v756_v49 = vmul.f32 %v755_v7, %v723_v52  ;;  %v758_v39 = vmul.f32 %v757_v23, %v723_v52  ;;  %v773_v53 = vmul.f32 %v771_v14, %v723_v52  ;;  %v761_v57 = vsub.f32 1.0, %v760_v11 }
 0x230   :  { %v1229_v2 = vsel %vm326_vm1, 6.25e+10, %v1417_v0 }
 0x231   :  { %v1230_v22 = vsel %vm1228_vm15, 250000.0, %v1229_v2 }
 0x232   :  { %v1330_v50 = vpop.eup %1329 }
 0x233   :  { %v1146_v44 = vmul.f32 %v1330_v50, %v1144_v6  ;;  %vm1151_vm10 = vweird.f32 %v1330_v50  ;;  %v730_v6 = vmul.f32 %v728_v1, %v723_v52 }
 0x234   :  { %vm1869_vm12 = vmor %vm1150_vm9, %vm1151_vm10 }
 0x235   :  { %v1147_v16 = vsub.f32 1.0, %v1146_v44  ;;  %v731_v26 = vsub.f32 1.0, %v730_v6 }
 0x237   :  { %v1148_v37 = vmul.f32 %v1330_v50, %v1147_v16 }
 0x239   :  { %v1149_v27 = vadd.f32 %v1330_v50, %v1148_v37 }
 0x23b   :  { %v1153_v10 = vsel %vm1869_vm12, %v1330_v50, %v1149_v27 }
 0x23c   :  { %v1158_v24 = vsel %vm1155_vm13, %v1157_v19, %v1153_v10 }
 0x23d   :  { %v1159_v41 = vmul.f32 2.0, %v1158_v24 }
 0x23f   :  { %v1166_v58 = vmul.f32 %v1164_v31, %v1159_v41  ;;  %v1180_v40 = vmul.f32 %v1179_v30, %v1159_v41  ;;  %v1192_v60 = vmul.f32 %v1191_v35, %v1159_v41  ;;  %v1194_v55 = vmul.f32 %v1193_v48, %v1159_v41 }
 0x240   :  { %v1196_v61 = vmul.f32 %v1195_v8, %v1159_v41  ;;  %v1209_v46 = vmul.f32 %v1207_v28, %v1159_v41 }
 0x241   :  { %v1167_v9 = vsub.f32 1.0, %v1166_v58  ;;  %v1213_v42 = vsub.f32 %v744_v36, %v1180_v40  ;;  %v1216_v54 = vsub.f32 %v756_v49, %v1192_v60  ;;  %v1219_v51 = vsub.f32 %v758_v39, %v1194_v55 }
 0x242   :  { %v1197_v20 = vsub.f32 1.0, %v1196_v61  ;;  %v1225_v29 = vsub.f32 %v773_v53, %v1209_v46 }
 0x243   :  { %v1210_v56 = vsub.f32 %v731_v26, %v1167_v9  ;;  %v1214_v50 = vmul.f32 %v1213_v42, %v1213_v42  ;;  %v1217_v12 = vmul.f32 %v1216_v54, %v1216_v54  ;;  %v1220_v44 = vmul.f32 %v1219_v51, %v1219_v51 }
 0x244   :  { %v1222_v43 = vsub.f32 %v761_v57, %v1197_v20  ;;  %v1226_v1 = vmul.f32 %v1225_v29, %v1225_v29 }
 0x245   :  { %v1211_v59 = vmul.f32 %v1210_v56, %v1210_v56 }
 0x246   :  { %v1223_v15 = vmul.f32 %v1222_v43, %v1222_v43 }
 0x247   :  { %v1215_v3 = vadd.f32 %v1214_v50, %v1211_v59 }
 0x249   :  { %v1218_v34 = vadd.f32 %v1217_v12, %v1215_v3 }
 0x24b   :  { %v1221_v62 = vadd.f32 %v1220_v44, %v1218_v34 }
 0x24d   :  { %v1224_v17 = vadd.f32 %v1223_v15, %v1221_v62 }
 0x24f   :  { %v1227_v16 = vadd.f32 %v1226_v1, %v1224_v17 }
 0x251   :  { %v1232_v5 = vmul.f32 %v1230_v22, %v1227_v16 }
 0x253   :  { %v1233_v52 = vsel %vm302_vm14, %v1232_v5, 0.0 }
 0x254   :  { %1234 = vadd.xlane.f32.xlu0 %v1233_v52 }
 0x2c7   :  { %v1235_v32 = vpop.xlane.xlu0 %1234 }
 0x2c8   :  { %v1236_v4 = vrot.slane %v1235_v32, 4 }
 0x2ca   :  { %v1237_v47 = vadd.f32 %v1236_v4, %v1235_v32 }
 0x2cc   :  { %v1238_v37 = vrot.slane %v1237_v47, 2 }
 0x2ce   :  { %v1239_v13 = vadd.f32 %v1238_v37, %v1237_v47 }
 0x2d0   :  { %v1240_v63 = vrot.slane %v1239_v13, 1 }
 0x2d2   :  { %v1241_v45 = vadd.f32 %v1240_v63, %v1239_v13 }
 0x2d4   :  { %1283 = vpush %v1241_v45 }
 0x305   :  { %s1284_s6 = spop %1283 }
 0x306   :  { %s1243_s7 = sadd.f32 %s1284_s6, %s1231_s5 }
 0x308   :  { %1244 = sst [smem:[#allocation9]] %s1243_s7 }
 0x309 PF:  { %s1250_s10 = sshll.u32 %s1889_s3, 4  ;;  %s1426_s11 = smov [#allocation9]   ;;  %s1251_s10 = int_to_ptr.hbm [resolvable:$true] %s1250_s10 }
 0x30a   :  { %1253 = dma.smem_to_hbm %s1426_s11, 16, %s1251_s10, [#allocation5]  }
 0x30b   :  { %1409 = dma.done.wait [#allocation5], 16  }
 0x30c   :  { %1410 = vsyncadd [#allocation5], 4294967280 }
 0x30d   :  { %1258 = sfence }
 0x30e   :  { %1259 = vsyncpa [#allocation3], 1 }
 0x30f   :  { %1260 = vsyncpa [#allocation8], 1 }
 0x310   :  { %1261 = vsyncpa [#allocation4], 1 }
 0x311   :  { %1262 = vsyncpa [#allocation5], 1 }

</bundles_post_ra>
